<compile_context>
chip_gen: v7x
topology: tpu7x:2x2x1
jax: 0.10.0
libtpu: 0.0.40
codegen_flags: <defaults>
</compile_context>

<pallas_src>
import functools
import math

import jax
import jax.numpy as jnp
from jax.experimental import pallas as pl
from jax.experimental.pallas import tpu as pltpu


def _binlinear_kernel(x_ref, w_ref, m_ref, b_ref, o_ref):
    k = pl.program_id(2)

    @pl.when(k == 0)
    def _init():
        o_ref[...] = jnp.zeros_like(o_ref)

    x = x_ref[...]                         # (tm, tk)  bf16 (or f32)
    w = w_ref[...]                         # (tn, tk)  bf16 +-1/0 (or f32)

    # x @ sign(W).T, contraction on last dims of both operands (no transpose), f32 accum.
    o_ref[...] += jax.lax.dot_general(
        x, w,
        dimension_numbers=(((1,), (1,)), ((), ())),
        preferred_element_type=jnp.float32)

    @pl.when(k == pl.num_programs(2) - 1)
    def _finalize():
        # Per-output-feature scale (1, tn) and bias (1, tn), applied once to the tile.
        o_ref[...] = o_ref[...] * m_ref[...] + b_ref[...]


def bin_linear(x, weight, bias=None, *, tm=256, tn=512, tk=512, use_bf16=True):
    """x: (M, K) f32, weight: (N, K) f32, bias: (N,) f32 or None -> (M, N) f32."""
    M, K = x.shape
    N, K2 = weight.shape
    assert K == K2, "in_features mismatch"
    if bias is None:
        bias = jnp.zeros((N,), dtype=jnp.float32)

    def rup(a, b):
        return (a + b - 1) // b * b

    # Clamp tiles to the (padded) problem size; lane dims stay multiples of 128,
    # sublane dims multiples of 8 (or the full padded dim).
    tm = min(tm, rup(M, 8))
    tn = min(tn, rup(N, 128))
    tk = min(tk, rup(K, 128))
    Mp, Np, Kp = rup(M, tm), rup(N, tn), rup(K, tk)

    mxu_dtype = jnp.bfloat16 if use_bf16 else jnp.float32

    # --- one-time wrapper prep (exact, from the original f32 weights) ---
    w32 = weight.astype(jnp.float32)
    m_row = (jnp.sum(jnp.abs(w32), axis=1) / K).reshape(1, N)      # exact f32 sum / n
    sgn = jnp.sign(w32).astype(mxu_dtype)                           # +-1/0, exact in bf16

    xp = x.astype(mxu_dtype)
    if (Mp, Kp) != (M, K):
        xp = jnp.pad(xp, ((0, Mp - M), (0, Kp - K)))
    if (Np, Kp) != (N, K):
        sgn = jnp.pad(sgn, ((0, Np - N), (0, Kp - K)))
    bp = bias.astype(jnp.float32).reshape(1, N)
    if Np != N:
        bp = jnp.pad(bp, ((0, 0), (0, Np - N)))
        m_row = jnp.pad(m_row, ((0, 0), (0, Np - N)))

    grid = (Mp // tm, Np // tn, Kp // tk)

    # Double-buffered VMEM footprint estimate; raise the scoped limit only when large
    # tiles need it (v5e default scoped VMEM is 16 MiB, v7x physical VMEM is 64 MiB).
    itemsize = jnp.dtype(mxu_dtype).itemsize
    est = 2 * (tm * tk + tn * tk) * itemsize + 2 * tm * tn * 4 + 8 * tn * 4
    vmem_limit = None
    if est > 12 * 1024 * 1024:
        vmem_limit = min(int(est * 3 // 2), 48 * 1024 * 1024)

    out = pl.pallas_call(
        _binlinear_kernel,
        out_shape=jax.ShapeDtypeStruct((Mp, Np), jnp.float32),
        grid_spec=pltpu.PrefetchScalarGridSpec(
            num_scalar_prefetch=0,
            grid=grid,
            in_specs=[
                pl.BlockSpec((tm, tk), lambda i, j, k: (i, k)),   # x
                pl.BlockSpec((tn, tk), lambda i, j, k: (j, k)),   # sign(W), bf16
                pl.BlockSpec((1, tn), lambda i, j, k: (0, j)),    # m (per-row scale)
                pl.BlockSpec((1, tn), lambda i, j, k: (0, j)),    # bias
            ],
            out_specs=pl.BlockSpec((tm, tn), lambda i, j, k: (i, j)),
        ),
        compiler_params=pltpu.CompilerParams(
            dimension_semantics=("parallel", "parallel", "arbitrary"),
            vmem_limit_bytes=vmem_limit),
    )(xp, sgn, m_row, bp)

    return out[:M, :N]


def bin_linear_ref(x, weight, bias):
    n = weight.shape[1]
    m = jnp.sum(jnp.abs(weight), axis=1, keepdims=True) / n
    w_hat = jnp.sign(weight) * m
    out = jax.lax.dot_general(
        x, w_hat, dimension_numbers=(((1,), (1,)), ((), ())),
        precision=jax.lax.Precision.HIGHEST,
        preferred_element_type=jnp.float32)
    return out + bias[None, :]


if __name__ == "__main__":
    key = jax.random.PRNGKey(0)
    k1, k2, k3, k4, k5, k6 = jax.random.split(key, 6)

    # --- Case 1: tiled shapes, exercises the (M, N, K) grid = (1, 2, 2) with defaults ---
    batch, in_features, out_features = 64, 1024, 1024
    x = jax.random.normal(k1, (batch, in_features), dtype=jnp.float32)
    weight = jax.random.normal(k2, (out_features, in_features), dtype=jnp.float32) \
             * math.sqrt(1.0 / in_features)
    bias = 0.1 * jax.random.normal(k3, (out_features,), dtype=jnp.float32)

    ref = bin_linear_ref(x, weight, bias)

    out_f32 = jax.block_until_ready(bin_linear(x, weight, bias, use_bf16=False))
    assert out_f32.shape == (batch, out_features)
    assert jnp.allclose(out_f32, ref, atol=5e-3, rtol=5e-3), "f32 path mismatch"

    out_bf16 = jax.block_until_ready(bin_linear(x, weight, bias, use_bf16=True))
    assert jnp.allclose(out_bf16, ref, atol=3e-2, rtol=3e-2), "bf16 path mismatch"

    # --- Case 2: small, unaligned shapes (original toy sizes) -> padding path ---
    b2, in2, out2 = 8, 32, 16
    x2 = jax.random.normal(k4, (b2, in2), dtype=jnp.float32)
    w2 = jax.random.normal(k5, (out2, in2), dtype=jnp.float32) * math.sqrt(1.0 / in2)
    bias2 = 0.1 * jax.random.normal(k6, (out2,), dtype=jnp.float32)

    ref2 = bin_linear_ref(x2, w2, bias2)
    out2_k = jax.block_until_ready(bin_linear(x2, w2, bias2, use_bf16=True))
    assert out2_k.shape == (b2, out2)
    assert jnp.allclose(out2_k, ref2, atol=3e-2, rtol=3e-2), "padded small-shape mismatch"

    print("KERNEL_OK")
</pallas_src>

<mosaic_0001>
module attributes {stable_mosaic.version = 11 : i64} {
  func.func @_binlinear_kernel(%arg0: i32, %arg1: i32, %arg2: i32, %arg3: memref<64x512xf32, #tpu.memory_space<vmem>>, %arg4: memref<512x512xf32, #tpu.memory_space<vmem>>, %arg5: memref<1x512xf32, #tpu.memory_space<vmem>>, %arg6: memref<1x512xf32, #tpu.memory_space<vmem>>, %arg7: memref<64x512xf32, #tpu.memory_space<vmem>>) attributes {dimension_semantics = [#tpu.dimension_semantics<parallel>, #tpu.dimension_semantics<parallel>, #tpu.dimension_semantics<arbitrary>], iteration_bounds = array<i64: 1, 2, 2>, scalar_prefetch = 0 : i64, scratch_operands = 0 : i64, tpu.core_type = #tpu.core_type<tc>, window_params = [{transform_indices = @transform_0, window_bounds = array<i64: 64, 512>}, {transform_indices = @transform_1, window_bounds = array<i64: 512, 512>}, {transform_indices = @transform_2, window_bounds = array<i64: 1, 512>}, {transform_indices = @transform_3, window_bounds = array<i64: 1, 512>}, {transform_indices = @transform_4, window_bounds = array<i64: 64, 512>}]} {
    %c0_i32 = arith.constant 0 : i32
    %0 = arith.cmpi eq, %arg2, %c0_i32 : i32
    %1 = arith.extui %0 : i1 to i32
    %c0_i32_0 = arith.constant 0 : i32
    %2 = arith.cmpi ne, %1, %c0_i32_0 : i32
    scf.if %2 {
      %cst_9 = arith.constant 0.000000e+00 : f32
      %12 = vector.broadcast %cst_9 : f32 to vector<64x512xf32>
      %c0_10 = arith.constant 0 : index
      %c0_11 = arith.constant 0 : index
      %13 = vector.load %arg7[%c0_10, %c0_11] : memref<64x512xf32, #tpu.memory_space<vmem>>, vector<64x512xf32>
      tpu.vector_store %arg7[%c0_10, %c0_11], %12 {strides = array<i32>} : memref<64x512xf32, #tpu.memory_space<vmem>>, vector<64x512xf32>,
    } else {
    }
    %c0 = arith.constant 0 : index
    %c0_1 = arith.constant 0 : index
    %3 = vector.load %arg3[%c0, %c0_1] : memref<64x512xf32, #tpu.memory_space<vmem>>, vector<64x512xf32>
    %c0_2 = arith.constant 0 : index
    %c0_3 = arith.constant 0 : index
    %4 = vector.load %arg4[%c0_2, %c0_3] : memref<512x512xf32, #tpu.memory_space<vmem>>, vector<512x512xf32>
    %c0_4 = arith.constant 0 : index
    %c0_5 = arith.constant 0 : index
    %5 = vector.load %arg7[%c0_4, %c0_5] : memref<64x512xf32, #tpu.memory_space<vmem>>, vector<64x512xf32>
    %cst = arith.constant dense<0.000000e+00> : vector<64x512xf32>
    %6 = tpu.matmul %3, %4, %cst {dimension_numbers = #tpu.dot_dimension_numbers<[1], [1], [0], [0], [0, 0, 1, 0], [], []>} : vector<64x512xf32>, vector<512x512xf32>, vector<64x512xf32> -> vector<64x512xf32>
    %7 = arith.addf %5, %6 : vector<64x512xf32>
    %c0_6 = arith.constant 0 : index
    %c0_7 = arith.constant 0 : index
    %8 = vector.load %arg7[%c0_6, %c0_7] : memref<64x512xf32, #tpu.memory_space<vmem>>, vector<64x512xf32>
    tpu.vector_store %arg7[%c0_6, %c0_7], %7 {strides = array<i32>} : memref<64x512xf32, #tpu.memory_space<vmem>>, vector<64x512xf32>,
    %c1_i32 = arith.constant 1 : i32
    %9 = arith.cmpi eq, %arg2, %c1_i32 : i32
    %10 = arith.extui %9 : i1 to i32
    %c0_i32_8 = arith.constant 0 : i32
    %11 = arith.cmpi ne, %10, %c0_i32_8 : i32
    scf.if %11 {
      %c0_9 = arith.constant 0 : index
      %c0_10 = arith.constant 0 : index
      %12 = vector.load %arg7[%c0_9, %c0_10] : memref<64x512xf32, #tpu.memory_space<vmem>>, vector<64x512xf32>
      %c0_11 = arith.constant 0 : index
      %c0_12 = arith.constant 0 : index
      %13 = vector.load %arg5[%c0_11, %c0_12] : memref<1x512xf32, #tpu.memory_space<vmem>>, vector<1x512xf32>
      %14 = vector.broadcast %13 : vector<1x512xf32> to vector<64x512xf32>
      %15 = arith.mulf %12, %14 : vector<64x512xf32>
      %c0_13 = arith.constant 0 : index
      %c0_14 = arith.constant 0 : index
      %16 = vector.load %arg6[%c0_13, %c0_14] : memref<1x512xf32, #tpu.memory_space<vmem>>, vector<1x512xf32>
      %17 = vector.broadcast %16 : vector<1x512xf32> to vector<64x512xf32>
      %18 = arith.addf %15, %17 : vector<64x512xf32>
      %c0_15 = arith.constant 0 : index
      %c0_16 = arith.constant 0 : index
      %19 = vector.load %arg7[%c0_15, %c0_16] : memref<64x512xf32, #tpu.memory_space<vmem>>, vector<64x512xf32>
      tpu.vector_store %arg7[%c0_15, %c0_16], %18 {strides = array<i32>} : memref<64x512xf32, #tpu.memory_space<vmem>>, vector<64x512xf32>,
    } else {
    }
    return
  }
  func.func @transform_0(%arg0: i32, %arg1: i32, %arg2: i32) -> (i32, i32) {
    %c0_i32 = arith.constant 0 : i32
    return %arg0, %arg2 : i32, i32
  }
  func.func @transform_1(%arg0: i32, %arg1: i32, %arg2: i32) -> (i32, i32) {
    %c0_i32 = arith.constant 0 : i32
    return %arg1, %arg2 : i32, i32
  }
  func.func @transform_2(%arg0: i32, %arg1: i32, %arg2: i32) -> (i32, i32) {
    %c0_i32 = arith.constant 0 : i32
    %c0_i32_0 = arith.constant 0 : i32
    return %c0_i32, %arg1 : i32, i32
  }
  func.func @transform_3(%arg0: i32, %arg1: i32, %arg2: i32) -> (i32, i32) {
    %c0_i32 = arith.constant 0 : i32
    %c0_i32_0 = arith.constant 0 : i32
    return %c0_i32, %arg1 : i32, i32
  }
  func.func @transform_4(%arg0: i32, %arg1: i32, %arg2: i32) -> (i32, i32) {
    %c0_i32 = arith.constant 0 : i32
    return %arg0, %arg1 : i32, i32
  }
}

</mosaic_0001>

<bundles_post_ra>
// kernel: tpu_custom_call.1
= control target key start
LH: loop header
LB: loop body
LE: loop exit
PB: predicated region body
PF: predicated region fallthrough
CT: control target
= control target key end

     0   :  { %s3380_s0 = inlined_call_operand.hbm [shape: f32[64,1024], index: 0, kind: input, shape index: {}]   ;;  %s3381_s1 = inlined_call_operand.hbm [shape: f32[1024,1024], index: 1, kind: input, shape index: {}]   ;;  %s3382_s2 = inlined_call_operand.hbm [shape: f32[1,1024], index: 2, kind: input, shape index: {}]   ;;  %s3383_s3 = inlined_call_operand.hbm [shape: f32[1,1024], index: 3, kind: input, shape index: {}]   ;;  %s3384_s4 = inlined_call_operand.hbm [shape: f32[64,1024], index: 4, kind: output, shape index: {}]  }
   0x1   :  { %3402 = sst [smem:[#allocation24_spill]] %s3380_s0 }
   0x2   :  { %3403 = sst [smem:[#allocation25_spill]] %s3381_s1 }
   0x3   :  { %3404 = sst [smem:[#allocation26_spill]] %s3382_s2 }
   0x4   :  { %3405 = sst [smem:[#allocation27_spill]] %s3383_s3 }
   0x5   :  { %3406 = sst [smem:[#allocation28_spill]] %s3384_s4 }
   0x6   :  { %9 = vsyncpa [#allocation3], 0 }
   0x7   :  { %11 = vsyncpa [#allocation3 + $0x1], 0 }
   0x8   :  { %12 = vsyncpa [#allocation6], 0 }
   0x9   :  { %14 = vsyncpa [#allocation6 + $0x1], 0 }
   0xa   :  { %15 = vsyncpa [#allocation9], 0 }
   0xb   :  { %17 = vsyncpa [#allocation9 + $0x1], 0 }
   0xc   :  { %18 = vsyncpa [#allocation4], 0 }
   0xd   :  { %20 = vsyncpa [#allocation4 + $0x1], 0  ;;  %s2384_s15 = smov 0   ;;  %s2386_s16 = smov 0  }
   0xe   :  { %s2388_s17 = smov 0   ;;  %s2390_s18 = smov 0  }
   0xf   :  { %s2392_s19 = smov 0   ;;  %s2394_s20 = smov 0  }
  0x10   :  { %s2396_s21 = smov 0   ;;  %s2398_s22 = smov 0  }
  0x11   :  { %s2400_s23 = smov 0   ;;  %s2402_s24 = smov 0  }
  0x12   :  { %s2404_s25 = smov 0   ;;  %s2406_s26 = smov 0  }
  0x13   :  { %s2408_s27 = smov 0   ;;  %s2410_s28 = smov 0  }
  0x14 LB: > { %3407 = sst [smem:[#allocation16_spill]] %s2293_s15  ;;  %s38_s29 = sadd.s32 1, %s2337_s26  ;;  %s2345_s28 = sphi %s2410_s28, %s26_s28   ;;  %s2341_s27 = sphi %s2408_s27, %s3469_s27   ;;  %s2337_s26 = sphi %s2406_s26, %s3458_s26   ;;  %s2333_s25 = sphi %s2404_s25, %s3468_s25   ;;  %s2329_s24 = sphi %s2402_s24, %s3457_s24   ;;  %s2325_s23 = sphi %s2400_s23, %s3456_s23   ;;  %s2321_s22 = sphi %s2398_s22, %s3467_s22   ;;  %s2317_s21 = sphi %s2396_s21, %s3466_s21   ;;  %s2313_s20 = sphi %s2394_s20, %s3465_s20   ;;  %s2309_s19 = sphi %s2392_s19, %s3464_s19   ;;  %s2305_s18 = sphi %s2390_s18, %s3463_s18   ;;  %s2301_s17 = sphi %s2388_s17, %s3462_s17   ;;  %s2297_s16 = sphi %s2386_s16, %s3461_s16   ;;  %s2293_s15 = sphi %s2384_s15, %s3460_s15  }
  0x15   : > { %3408 = sst [smem:[#allocation17_spill]] %s2325_s23  ;;  %s41_s30 = sadd.s32 1, %s2341_s27 }
  0x16   : > { %3409 = sst [smem:[#allocation18_spill]] %s2329_s24  ;;  %p39_p0 = scmp.ge.s32.totalorder %s38_s29, 2 }
  0x17   : > { %3410 = sst [smem:[#allocation19_spill]] %s2333_s25  ;;  %p3391_p1 = scmp.eq.s32.totalorder %s2345_s28, 0 }
  0x18   : > { %3411 = sst [smem:[#allocation20_spill]] %s2337_s26  ;;  %s82_s5 = sadd.s32 1, %s2313_s20 }
  0x19   : > { %p89_p2 = scmp.ne.s32.totalorder %s2313_s20, %s2309_s19  ;;  %s3471_s29 = smov (%p39_p0, %s38_s29), 0 }
  0x1a   : > { %3412 = sst [smem:[#allocation21_spill]] %s3471_s29  ;;  %s3473_s30 = smov (!%p39_p0, %s41_s30), %s2341_s27 }
  0x1b   : > { %s2465_s6 = ssub.s32 %s2337_s26, %s3471_s29  ;;  %p2469_p3 = por %p89_p2, %p3391_p1 }
  0x1c   : > { %p43_p4 = scmp.ge.s32.totalorder %s3473_s30, 2  ;;  %p3390_p7 = scmp.lt.s32.totalorder %s2345_s28, 4 }
  0x1d   : > { %s223_s10 = sand.u32 1, %s2345_s28   ;;  %s225_s11 = sand.u32 1, %s2313_s20  }
  0x1e   : > { %s3475_s30 = smov (%p43_p4, %s3473_s30), 0  ;;  %s1602_s13 = sshll.u32 %s225_s11, 11 }
  0x1f   : > { %3414 = sst [smem:[#allocation22_spill]] %s3475_s30  ;;  %s2481_s8 = ssub.s32 %s2341_s27, %s3475_s30 }
  0x20   : > { %s79_s9 = sor.u32 %s2481_s8, %s2465_s6  ;;  %s1604_s14 = sshll.u32 %s2337_s26, 2 }
  0x21   : > { %p80_p8 = scmp.eq.s32.totalorder %s79_s9, 0  ;;  %s1627_s29 = sshll.u32 %s2341_s27, 9 }
  0x22   : > { %s234_s4 = sadd.s32 %s1627_s29, %s1604_s14  ;;  %s227_s25 = scalar_lea.vmem [#allocation5], %s1602_s13 }
  0x23   : > { %s2488_s12 = scalar_select %p80_p8, %s2313_s20, %s82_s5  }
  0x24   : > { %s237_s24 = sshll.u32 %s227_s25, 4  ;;  %s1606_s3 = sshll.u32 %s234_s4, 7  ;;  %s2492_s24 = int_to_ptr.vmem [resolvable:$true] %s237_s24 }
  0x25   : > { %s3415_s1 = sld [smem:[#allocation25_spill]]  ;;  %p2503_p9 = pnand %p3390_p7, %p2469_p3 }
  0x26   : > { %p283_p11 = scmp.lt.s32.totalorder %s2345_s28, 5  ;;  %s2509_s4 = scalar_lea.sflag [#allocation6], %s223_s10 }
  0x27   : > { %p2069_p13 = pneg %p2503_p9 }
  0x2b   : > { %s2497_s15 = scalar_lea.hbm %s3415_s1, %s1606_s3  ;;  %s2072_s29 = scalar_lea.hbm %s3415_s1, 131072 }
  0x2c   : > { %s2067_s25 = scalar_lea.hbm %s2497_s15, 32768  ;;  %p2073_p3 = scmp.lt.u32.totalorder %s2497_s15, %s3415_s1 }
  0x2d   : > { %p2068_p12 = scmp.ne.s32.totalorder %s2497_s15, %s2067_s25  ;;  %p2074_p4 = scmp.lt.u32.totalorder %s2072_s29, %s2067_s25 }
  0x2e   : > { %p2076_p6 = scmp.lt.u32.totalorder %s2067_s25, %s2497_s15 }
  0x2f   : > { %p2070_p0 = pnand %p2069_p13, %p2068_p12  ;;  %p2075_p8 = por %p2074_p4, %p2073_p3 }
  0x31   : > { %p2071_p2 = pneg %p2070_p0  ;;  %p2077_p7 = por %p2076_p6, %p2075_p8 }
  0x33   : > { %p2078_p1 = pnand %p2077_p7, %p2071_p2 }
  0x35   : > { %2081 = shalt.err (!%p2078_p1)
}
  0x36   : > { %s2082_s9 = scalar_lea.vmem %s2492_s24, 32768  ;;  %s2347_s10 = smov [#allocation5]  }
  0x37   : > { %p2083_p12 = scmp.ne.s32.totalorder %s2492_s24, %s2082_s9  ;;  %s2087_s11 = sshll.u32 %s2347_s10, 4  ;;  %s2088_s11 = int_to_ptr.vmem [resolvable:$false] %s2087_s11 }
  0x38   : > { %s2089_s13 = scalar_lea.vmem %s2088_s11, 65536  ;;  %p2090_p10 = scmp.lt.s32.totalorder %s2492_s24, %s2088_s11 }
  0x39   : > { %p2085_p0 = pnand %p2083_p12, %p2069_p13  ;;  %p2091_p3 = scmp.lt.s32.totalorder %s2089_s13, %s2082_s9 }
  0x3b   : > { %p2086_p5 = pneg %p2085_p0  ;;  %p2092_p4 = por %p2091_p3, %p2090_p10 }
  0x3d   : > { %p2093_p6 = pnand %p2092_p4, %p2086_p5 }
  0x3f   : > { %2096 = shalt.err (!%p2093_p6)
}
  0x40   : > { %s3392_s14 = smov 1024   ;;  %s2349_s25 = smov 512  }
  0x41   : > { %s2350_s2 = smov 32   ;;  %p3417_p1 = scmp.ge.s32.totalorder %s2345_s28, 1 }
  0x42   : > { %1935 = dma.hbm_to_vmem [thread:$0]  (!%p2503_p9), %s2497_s15, 32768, %s2492_s24, %s2509_s4, %s3392_s14, %s2349_s25, %s2350_s2  }
  0x43   : > { %p2544_p5 = pnand %p3417_p1, %p283_p11  ;;  %s54_s29 = sadd.s32 1, %s2325_s23 }
  0x44   : > { %p61_p7 = scmp.ne.s32.totalorder %s2325_s23, %s2321_s22  ;;  %p3419_p10 = scmp.eq.s32.totalorder %s2465_s6, 0 }
  0x45   : > { %s3418_s3 = scalar_select %p2544_p5, 1, 0 }
  0x46   : > { %s2554_s30 = scalar_select %p3419_p10, %s2325_s23, %s54_s29  }
  0x47   : > { %p3421_p13 = scmp.eq.s32.totalorder %s2345_s28, 0  ;;  %s199_s7 = sand.u32 1, %s2325_s23  }
  0x48   : > { %3420 = sst [smem:[#allocation23_spill]] %s2554_s30  ;;  %s1626_s5 = sshll.u32 %s2337_s26, 9 }
  0x49   : > { %p63_p2 = por %p3421_p13, %p61_p7  ;;  %s1599_s9 = sshll.u32 %s199_s7, 8 }
  0x4a   : > { %s3422_s0 = sld [smem:[#allocation24_spill]]  ;;  %s203_s24 = scalar_lea.vmem [#allocation2], %s1599_s9 }
  0x4b   : > { %s213_s13 = sshll.u32 %s203_s24, 4  ;;  %p3423_p9 = scmp.lt.s32.totalorder %s2345_s28, 4  ;;  %s2573_s13 = int_to_ptr.vmem [resolvable:$true] %s213_s13 }
  0x4c   : > { %s2575_s29 = scalar_lea.sflag [#allocation3], %s199_s7 }
  0x4d   : > { %p2569_p11 = pnand %p3423_p9, %p63_p2 }
  0x4f   : > { %p2099_p0 = pneg %p2569_p11 }
  0x50   : > { %s2565_s15 = scalar_lea.hbm %s3422_s0, %s1626_s5  ;;  %s2102_s11 = scalar_lea.hbm %s3422_s0, 8192 }
  0x51   : > { %s2097_s10 = scalar_lea.hbm %s2565_s15, 4096  ;;  %p2103_p6 = scmp.lt.u32.totalorder %s2565_s15, %s3422_s0 }
  0x52   : > { %p2098_p12 = scmp.ne.s32.totalorder %s2565_s15, %s2097_s10  ;;  %p2104_p1 = scmp.lt.u32.totalorder %s2102_s11, %s2097_s10 }
  0x53   : > { %p2106_p10 = scmp.lt.u32.totalorder %s2097_s10, %s2565_s15 }
  0x54   : > { %p2100_p3 = pnand %p2099_p0, %p2098_p12  ;;  %p2105_p7 = por %p2104_p1, %p2103_p6 }
  0x56   : > { %p2101_p4 = pneg %p2100_p3  ;;  %p2107_p13 = por %p2106_p10, %p2105_p7 }
  0x58   : > { %p2108_p2 = pnand %p2107_p13, %p2101_p4 }
  0x5a   : > { %2111 = shalt.err (!%p2108_p2)
}
  0x5b   : > { %s2112_s7 = scalar_lea.vmem %s2573_s13, 4096  ;;  %s2351_s5 = smov [#allocation2]  }
  0x5c   : > { %p2113_p9 = scmp.ne.s32.totalorder %s2573_s13, %s2112_s7  ;;  %s2117_s9 = sshll.u32 %s2351_s5, 4  ;;  %s2118_s9 = int_to_ptr.vmem [resolvable:$false] %s2117_s9 }
  0x5d   : > { %s2119_s14 = scalar_lea.vmem %s2118_s9, 8192  ;;  %p2120_p8 = scmp.lt.s32.totalorder %s2573_s13, %s2118_s9 }
  0x5e   : > { %p2115_p12 = pnand %p2113_p9, %p2099_p0  ;;  %p2121_p6 = scmp.lt.s32.totalorder %s2119_s14, %s2112_s7 }
  0x60   : > { %p2116_p3 = pneg %p2115_p12  ;;  %p2122_p1 = por %p2121_p6, %p2120_p8 }
  0x62   : > { %p2123_p7 = pnand %p2122_p1, %p2116_p3 }
  0x64   : > { %2126 = shalt.err (!%p2123_p7)
}
  0x65   : > { %s3425_s10 = smov 1024   ;;  %s3426_s11 = sld [smem:[#allocation16_spill]] }
  0x66   : > { %1932 = dma.hbm_to_vmem [thread:$0]  (!%p2569_p11), %s2565_s15, 4096, %s2573_s13, %s2575_s29, %s3425_s10, %s2349_s25, %s2350_s2  }
  0x67   : > { %s2607_s6 = sadd.s32 4294967295, %s2345_s28   ;;  %s1596_s24 = sadd.s32 4294967294, %s2345_s28  }
  0x68   : > { %p68_p8 = scmp.eq.s32.totalorder %s2607_s6, 0  ;;  %p106_p0 = scmp.eq.s32.totalorder %s2481_s8, 0 }
  0x69   : > { %s108_s7 = sadd.s32 1, %s2301_s17  ;;  %p115_p4 = scmp.ne.s32.totalorder %s2301_s17, %s2297_s16 }
  0x6a   : > { %p3427_p10 = scmp.ne.s32.totalorder %s2321_s22, %s2317_s21  ;;  %p3429_p2 = scmp.ne.s32.totalorder %s2309_s19, %s2305_s18 }
  0x6b   : > { %s2630_s2 = scalar_select %p106_p0, %s2301_s17, %s108_s7  }
  0x6c   : > { %p2618_p13 = por %p68_p8, %p3427_p10  ;;  %p2625_p11 = por %p3429_p2, %p68_p8 }
  0x6d   : > { %p3431_p9 = scmp.eq.s32.totalorder %s2345_s28, 0  ;;  %p121_p3 = scmp.ne.s32.totalorder %s2297_s16, %s3426_s11 }
  0x6e   : > { %s3428_s5 = scalar_select %p2618_p13, 1, 0 }
  0x6f   : > { %s3430_s25 = scalar_select %p2625_p11, 1, 0 }
  0x70   : > { %p2634_p12 = por %p115_p4, %p3431_p9  ;;  %p173_p6 = scmp.eq.s32.totalorder %s2607_s6, 3 }
  0x71   : > { %p179_p1 = scmp.eq.s32.totalorder %s1596_s24, 3  ;;  %p2641_p7 = por %p121_p3, %p68_p8 }
  0x72   : > { %s3393_s18 = sand.u32 1, %s2301_s17   ;;  %p2646_p10 = por %p173_p6, %p115_p4 }
  0x73   : > { %s3433_s21 = scalar_select %p2641_p7, 1, 0 }
  0x74   : > { %s3434_s8 = scalar_select %p2646_p10, 1, 0 }
  0x75   : > { %p2650_p0 = por %p179_p1, %p121_p3  ;;  %s2656_s29 = sshll.u32 %s3393_s18, 2 }
  0x76   : > { %s3394_s9 = sshll.u32 %s2341_s27, 6  ;;  %s3436_s11 = sld [smem:[#allocation26_spill]] }
  0x77   : > { %s3435_s13 = scalar_select %p2650_p0, 1, 0 }
  0x78   : > { %s251_s7 = scalar_lea.vmem [#allocation7], %s2656_s29  ;;  %p3437_p8 = scmp.lt.s32.totalorder %s2345_s28, 4 }
  0x79   : > { %s259_s0 = sshll.u32 %s251_s7, 4  ;;  %s260_s0 = int_to_ptr.vmem [resolvable:$true] %s259_s0 }
  0x7a   : > { %p2671_p4 = pnand %p3437_p8, %p2634_p12 }
  0x7c   : > { %s2664_s24 = scalar_lea.hbm %s3436_s11, %s3394_s9  ;;  %p2129_p9 = pneg %p2671_p4 }
  0x7d   : > { %s2127_s18 = scalar_lea.hbm %s2664_s24, 64  ;;  %s2132_s15 = scalar_lea.hbm %s3436_s11, 128 }
  0x7e   : > { %p2128_p2 = scmp.ne.s32.totalorder %s2664_s24, %s2127_s18  ;;  %p2133_p12 = scmp.lt.u32.totalorder %s2664_s24, %s3436_s11 }
  0x7f   : > { %p2134_p1 = scmp.lt.u32.totalorder %s2132_s15, %s2127_s18  ;;  %p2136_p0 = scmp.lt.u32.totalorder %s2127_s18, %s2664_s24 }
  0x80   : > { %p2130_p3 = pnand %p2129_p9, %p2128_p2 }
  0x81   : > { %p2135_p8 = por %p2134_p1, %p2133_p12 }
  0x82   : > { %p2131_p6 = pneg %p2130_p3 }
  0x83   : > { %p2137_p10 = por %p2136_p0, %p2135_p8 }
  0x85   : > { %p2138_p7 = pnand %p2137_p10, %p2131_p6 }
  0x87   : > { %2141 = shalt.err (!%p2138_p7)
}
  0x88   : > { %s2142_s26 = scalar_lea.vmem %s260_s0, 64  ;;  %s2352_s30 = smov [#allocation7]  }
  0x89   : > { %p2143_p11 = scmp.ne.s32.totalorder %s260_s0, %s2142_s26  ;;  %s2147_s14 = sshll.u32 %s2352_s30, 4  ;;  %s2148_s14 = int_to_ptr.vmem [resolvable:$false] %s2147_s14 }
  0x8a   : > { %s2149_s10 = scalar_lea.vmem %s2148_s14, 128  ;;  %p2150_p13 = scmp.lt.s32.totalorder %s260_s0, %s2148_s14 }
  0x8b   : > { %p2145_p2 = pnand %p2143_p11, %p2129_p9  ;;  %p2151_p5 = scmp.lt.s32.totalorder %s2149_s10, %s2142_s26 }
  0x8d   : > { %p2146_p3 = pneg %p2145_p2  ;;  %p2152_p1 = por %p2151_p5, %p2150_p13 }
  0x8f   : > { %p2153_p12 = pnand %p2152_p1, %p2146_p3 }
  0x91   : > { %2156 = shalt.err (!%p2153_p12)
}
  0x92   : > { %1938 = dma.hbm_to_vmem [thread:$0]  (!%p2671_p4), %s2664_s24, 64, %s260_s0, %s2509_s4  }
  0x93   : > { %s3439_s18 = sshll.u32 %s2341_s27, 6  ;;  %s3440_s30 = sld [smem:[#allocation27_spill]] }
  0x94   : > { %s270_s26 = scalar_lea.vmem [#allocation8], %s2656_s29  ;;  %s3441_s10 = sand.u32 1, %s2301_s17  }
  0x95   : > { %s278_s14 = sshll.u32 %s270_s26, 4  ;;  %s267_s11 = scalar_lea.sflag [#allocation9], %s3441_s10  ;;  %s279_s14 = int_to_ptr.vmem [resolvable:$true] %s278_s14 }
  0x99   : > { %s2702_s7 = scalar_lea.hbm %s3440_s30, %s3439_s18  ;;  %s2162_s24 = scalar_lea.hbm %s3440_s30, 128 }
  0x9a   : > { %s2157_s23 = scalar_lea.hbm %s2702_s7, 64  ;;  %p2163_p7 = scmp.lt.u32.totalorder %s2702_s7, %s3440_s30 }
  0x9b   : > { %p2158_p5 = scmp.ne.s32.totalorder %s2702_s7, %s2157_s23  ;;  %p2164_p10 = scmp.lt.u32.totalorder %s2162_s24, %s2157_s23 }
  0x9c   : > { %p2166_p6 = scmp.lt.u32.totalorder %s2157_s23, %s2702_s7 }
  0x9d   : > { %p2160_p13 = pnand %p2158_p5, %p2129_p9  ;;  %p2165_p0 = por %p2164_p10, %p2163_p7 }
  0x9f   : > { %p2161_p11 = pneg %p2160_p13  ;;  %p2167_p8 = por %p2166_p6, %p2165_p0 }
  0xa1   : > { %p2168_p2 = pnand %p2167_p8, %p2161_p11 }
  0xa3   : > { %2171 = shalt.err (!%p2168_p2)
}
  0xa4   : > { %s2172_s29 = scalar_lea.vmem %s279_s14, 64  ;;  %s2353_s15 = smov [#allocation8]  }
  0xa5   : > { %p2173_p3 = scmp.ne.s32.totalorder %s279_s14, %s2172_s29  ;;  %s2177_s26 = sshll.u32 %s2353_s15, 4  ;;  %s2178_s26 = int_to_ptr.vmem [resolvable:$false] %s2177_s26 }
  0xa6   : > { %s2179_s10 = scalar_lea.vmem %s2178_s26, 128  ;;  %p2180_p5 = scmp.lt.s32.totalorder %s279_s14, %s2178_s26 }
  0xa7   : > { %p2175_p1 = pnand %p2173_p3, %p2129_p9  ;;  %p2181_p13 = scmp.lt.s32.totalorder %s2179_s10, %s2172_s29 }
  0xa9   : > { %p2176_p12 = pneg %p2175_p1  ;;  %p2182_p7 = por %p2181_p13, %p2180_p5 }
  0xab   : > { %p2183_p10 = pnand %p2182_p7, %p2176_p12 }
  0xad   : > { %2186 = shalt.err (!%p2183_p10)
}
  0xae   : > { %1941 = dma.hbm_to_vmem [thread:$0]  (!%p2671_p4), %s2702_s7, 64, %s279_s14, %s267_s11  }
  0xaf   : > { %p3442_p11 = scmp.ne.s32.totalorder %s3418_s3, 0 }
  0xb0   : > { %s289_s23 = sand.u32 (!%p3442_p11), 1, %s2321_s22   ;;  %p3443_p9 = scmp.ne.s32.totalorder (!%p3442_p11), %s3428_s5, 0 }
  0xb1   : > { %287 = sbr.rel (%p3442_p11) target bundleno = 769 (0x301), region = 36  ;;  %s1614_s0 = sshll.u32 (!%p3442_p11), %s289_s23, 8 }
  0xb2   : > { %s290_s4 = scalar_lea.sflag (!%p3442_p11), [#allocation3], %s289_s23  ;;  %s2729_s24 = scalar_lea.vmem (!%p3442_p11), [#allocation2], %s1614_s0 }
  0xb8   : > { %2272 = dma.done.wait (%p3443_p9), %s290_s4, 4096  }
  0xb9   : > { %2274 = vsyncadd (%p3443_p9), %s290_s4, 4294963200  ;;  %s298_s1 = sand.u32 1, %s2607_s6   ;;  %s300_s11 = sand.u32 1, %s2309_s19  }
  0xba   : > { %s1615_s7 = sshll.u32 %s300_s11, 11  ;;  %s299_s3 = scalar_lea.sflag [#allocation6], %s298_s1 }
  0xbb   : > { %s2737_s14 = scalar_lea.vmem [#allocation5], %s1615_s7  ;;  %p3444_p4 = scmp.ne.s32.totalorder %s3430_s25, 0 }
  0xbd   : > { %2276 = dma.done.wait (%p3444_p4), %s299_s3, 32768  }
  0xbe   : > { %2278 = vsyncadd (%p3444_p4), %s299_s3, 4294934528  ;;  %s2744_s18 = sand.u32 1, %s2297_s16   ;;  %p3445_p0 = scmp.ne.s32.totalorder %s3433_s21, 0 }
  0xbf   : > { %s1616_s5 = sshll.u32 %s2744_s18, 2 }
  0xc0   : > { %s2747_s9 = scalar_lea.vmem [#allocation7], %s1616_s5 }
  0xc1   : > { %2280 = dma.done.wait (%p3445_p0), %s299_s3, 64  }
  0xc2   : > { %2282 = vsyncadd (%p3445_p0), %s299_s3, 4294967232  ;;  %s317_s6 = scalar_lea.sflag [#allocation9], %s2744_s18  ;;  %s2754_s29 = scalar_lea.vmem [#allocation8], %s1616_s5 }
  0xc3   : > { %2284 = dma.done.wait (%p3445_p0), %s317_s6, 64  }
  0xc4   : > { %2286 = vsyncadd (%p3445_p0), %s317_s6, 4294967232  ;;  %s1618_s25 = sshll.u32 %s2744_s18, 8  ;;  %s3446_s26 = sld [smem:[#allocation18_spill]] }
  0xc5   : > { %s2761_s15 = scalar_lea.vmem [#allocation10], %s1618_s25 }
  0xca   : > { %p1619_p6 = scmp.ne.s32.totalorder %s3446_s26, 0 }
  0xcb   : > { %v2354_v0 = vmov (!%p1619_p6), 0.0  }
  0xcc   : > { %371 = sbr.rel (%p1619_p6) target bundleno = 220 (0xdc), region = 56  ;;  %372 = vst [vmem:[%s2761_s15] sm:$0xff] (!%p1619_p6), %v2354_v0  ;;  %373 = vst [vmem:[%s2761_s15 + $0x8] sm:$0xff] (!%p1619_p6), %v2354_v0 }
  0xcd   : > { %374 = vst [vmem:[%s2761_s15 + $0x10] sm:$0xff] (!%p1619_p6), %v2354_v0  ;;  %375 = vst [vmem:[%s2761_s15 + $0x18] sm:$0xff] (!%p1619_p6), %v2354_v0 }
  0xce   : > { %376 = vst [vmem:[%s2761_s15 + $0x20] sm:$0xff] (!%p1619_p6), %v2354_v0  ;;  %377 = vst [vmem:[%s2761_s15 + $0x28] sm:$0xff] (!%p1619_p6), %v2354_v0 }
  0xcf   : > { %378 = vst [vmem:[%s2761_s15 + $0x30] sm:$0xff] (!%p1619_p6), %v2354_v0  ;;  %379 = vst [vmem:[%s2761_s15 + $0x38] sm:$0xff] (!%p1619_p6), %v2354_v0 }
  0xd0   : > { %380 = vst [vmem:[%s2761_s15 + $0x40] sm:$0xff] (!%p1619_p6), %v2354_v0  ;;  %381 = vst [vmem:[%s2761_s15 + $0x48] sm:$0xff] (!%p1619_p6), %v2354_v0 }
  0xd1   : > { %382 = vst [vmem:[%s2761_s15 + $0x50] sm:$0xff] (!%p1619_p6), %v2354_v0  ;;  %383 = vst [vmem:[%s2761_s15 + $0x58] sm:$0xff] (!%p1619_p6), %v2354_v0 }
  0xd2   : > { %384 = vst [vmem:[%s2761_s15 + $0x60] sm:$0xff] (!%p1619_p6), %v2354_v0  ;;  %385 = vst [vmem:[%s2761_s15 + $0x68] sm:$0xff] (!%p1619_p6), %v2354_v0 }
  0xd3   : > { %386 = vst [vmem:[%s2761_s15 + $0x70] sm:$0xff] %v2354_v0  ;;  %387 = vst [vmem:[%s2761_s15 + $0x78] sm:$0xff] %v2354_v0 }
  0xd4   : > { %388 = vst [vmem:[%s2761_s15 + $0x80] sm:$0xff] %v2354_v0  ;;  %389 = vst [vmem:[%s2761_s15 + $0x88] sm:$0xff] %v2354_v0 }
  0xd5   : > { %390 = vst [vmem:[%s2761_s15 + $0x90] sm:$0xff] %v2354_v0  ;;  %391 = vst [vmem:[%s2761_s15 + $0x98] sm:$0xff] %v2354_v0 }
  0xd6   : > { %392 = vst [vmem:[%s2761_s15 + $0xa0] sm:$0xff] %v2354_v0  ;;  %393 = vst [vmem:[%s2761_s15 + $0xa8] sm:$0xff] %v2354_v0 }
  0xd7   : > { %394 = vst [vmem:[%s2761_s15 + $0xb0] sm:$0xff] %v2354_v0  ;;  %395 = vst [vmem:[%s2761_s15 + $0xb8] sm:$0xff] %v2354_v0 }
  0xd8   : > { %396 = vst [vmem:[%s2761_s15 + $0xc0] sm:$0xff] %v2354_v0  ;;  %397 = vst [vmem:[%s2761_s15 + $0xc8] sm:$0xff] %v2354_v0 }
  0xd9   : > { %398 = vst [vmem:[%s2761_s15 + $0xd0] sm:$0xff] %v2354_v0  ;;  %399 = vst [vmem:[%s2761_s15 + $0xd8] sm:$0xff] %v2354_v0 }
  0xda   : > { %400 = vst [vmem:[%s2761_s15 + $0xe0] sm:$0xff] %v2354_v0  ;;  %401 = vst [vmem:[%s2761_s15 + $0xe8] sm:$0xff] %v2354_v0 }
  0xdb   : > { %402 = vst [vmem:[%s2761_s15 + $0xf0] sm:$0xff] %v2354_v0  ;;  %403 = vst [vmem:[%s2761_s15 + $0xf8] sm:$0xff] %v2354_v0 }
  0xdc PF: > { %v437_v1 = vld [vmem:[%s2737_s14 + $0x8] sm:$0xff]  ;;  %v436_v6 = vld [vmem:[%s2737_s14] sm:$0xff]  ;;  %s3447_s21 = sld [smem:[#allocation18_spill]] }
  0xdd   : > { %v441_v2 = vld [vmem:[%s2737_s14 + $0x28] sm:$0xff]  ;;  %v440_v7 = vld [vmem:[%s2737_s14 + $0x20] sm:$0xff] }
  0xde   : > { %v565_v3 = vld [vmem:[%s2737_s14 + $0x408] sm:$0xff]  ;;  %v1631_v4 = vpack.c.bf16 %v441_v2, %v437_v1  ;;  %v1633_v9 = vpack.c.bf16 %v440_v7, %v436_v6  ;;  %v564_v10 = vld [vmem:[%s2737_s14 + $0x400] sm:$0xff] }
  0xdf   : > { %v569_v5 = vld [vmem:[%s2737_s14 + $0x428] sm:$0xff]  ;;  %v568_v11 = vld [vmem:[%s2737_s14 + $0x420] sm:$0xff] }
  0xe0   : > { %v1759_v8 = vpack.c.bf16 %v569_v5, %v565_v3  ;;  %v445_v12 = vld [vmem:[%s2737_s14 + $0x48] sm:$0xff]  ;;  %1632 = vmatprep.subr.bf16.mxu0 %v1631_v4  ;;  %v1761_v13 = vpack.c.bf16 %v568_v11, %v564_v10  ;;  %v444_v19 = vld [vmem:[%s2737_s14 + $0x40] sm:$0xff] }
  0xe1   : > { %v449_v14 = vld [vmem:[%s2737_s14 + $0x68] sm:$0xff]  ;;  %1634 = vmatpush1.bf16.xpose.msra.mxu0 %v1633_v9  ;;  %v448_v20 = vld [vmem:[%s2737_s14 + $0x60] sm:$0xff] }
  0xe2   : > { %v573_v15 = vld [vmem:[%s2737_s14 + $0x448] sm:$0xff]  ;;  %1760 = vmatprep.subr.bf16.mxu1 %v1759_v8  ;;  %v1635_v17 = vpack.c.bf16 %v449_v14, %v445_v12  ;;  %v572_v21 = vld [vmem:[%s2737_s14 + $0x440] sm:$0xff]  ;;  %v1637_v27 = vpack.c.bf16 %v448_v20, %v444_v19  ;;  %p1620_p8 = scmp.ne.s32.totalorder %s3447_s21, 1 }
  0xe3   : > { %v577_v16 = vld [vmem:[%s2737_s14 + $0x468] sm:$0xff]  ;;  %1762 = vmatpush1.bf16.xpose.msra.mxu1 %v1761_v13  ;;  %v576_v22 = vld [vmem:[%s2737_s14 + $0x460] sm:$0xff] }
  0xe4   : > { %v1763_v18 = vpack.c.bf16 %v577_v16, %v573_v15  ;;  %1636 = vmatprep.subr.bf16.mxu0 %v1635_v17  ;;  %v453_v23 = vld [vmem:[%s2737_s14 + $0x88] sm:$0xff]  ;;  %v1765_v28 = vpack.c.bf16 %v576_v22, %v572_v21  ;;  %v452_v31 = vld [vmem:[%s2737_s14 + $0x80] sm:$0xff] }
  0xe5   : > { %v457_v24 = vld [vmem:[%s2737_s14 + $0xa8] sm:$0xff]  ;;  %v456_v32 = vld [vmem:[%s2737_s14 + $0xa0] sm:$0xff] }
  0xe6   : > { %1764 = vmatprep.subr.bf16.mxu1 %v1763_v18  ;;  %v581_v25 = vld [vmem:[%s2737_s14 + $0x488] sm:$0xff]  ;;  %v1639_v29 = vpack.c.bf16 %v457_v24, %v453_v23  ;;  %v580_v33 = vld [vmem:[%s2737_s14 + $0x480] sm:$0xff]  ;;  %v1641_v39 = vpack.c.bf16 %v456_v32, %v452_v31 }
  0xe7   : > { %v585_v26 = vld [vmem:[%s2737_s14 + $0x4a8] sm:$0xff]  ;;  %v584_v34 = vld [vmem:[%s2737_s14 + $0x4a0] sm:$0xff] }
  0xe8   : > { %v1767_v30 = vpack.c.bf16 %v585_v26, %v581_v25  ;;  %v461_v35 = vld [vmem:[%s2737_s14 + $0xc8] sm:$0xff]  ;;  %v1769_v40 = vpack.c.bf16 %v584_v34, %v580_v33  ;;  %v460_v43 = vld [vmem:[%s2737_s14 + $0xc0] sm:$0xff] }
  0xe9   : > { %1638 = vmatpush1.bf16.xpose.msra.mxu0 %v1637_v27  ;;  %v465_v36 = vld [vmem:[%s2737_s14 + $0xe8] sm:$0xff]  ;;  %v464_v44 = vld [vmem:[%s2737_s14 + $0xe0] sm:$0xff] }
  0xea   : > { %1640 = vmatprep.subr.bf16.mxu0 %v1639_v29  ;;  %v589_v37 = vld [vmem:[%s2737_s14 + $0x4c8] sm:$0xff]  ;;  %v1643_v41 = vpack.c.bf16 %v465_v36, %v461_v35  ;;  %v588_v45 = vld [vmem:[%s2737_s14 + $0x4c0] sm:$0xff]  ;;  %v1645_v51 = vpack.c.bf16 %v464_v44, %v460_v43 }
  0xeb   : > { %1766 = vmatpush1.bf16.xpose.msra.mxu1 %v1765_v28  ;;  %v593_v38 = vld [vmem:[%s2737_s14 + $0x4e8] sm:$0xff]  ;;  %v592_v46 = vld [vmem:[%s2737_s14 + $0x4e0] sm:$0xff] }
  0xec   : > { %1768 = vmatprep.subr.bf16.mxu1 %v1767_v30  ;;  %v1771_v42 = vpack.c.bf16 %v593_v38, %v589_v37  ;;  %v469_v47 = vld [vmem:[%s2737_s14 + $0x108] sm:$0xff]  ;;  %v1773_v52 = vpack.c.bf16 %v592_v46, %v588_v45  ;;  %v468_v55 = vld [vmem:[%s2737_s14 + $0x100] sm:$0xff] }
  0xed   : > { %v473_v48 = vld [vmem:[%s2737_s14 + $0x128] sm:$0xff]  ;;  %v472_v56 = vld [vmem:[%s2737_s14 + $0x120] sm:$0xff] }
  0xee   : > { %v597_v49 = vld [vmem:[%s2737_s14 + $0x508] sm:$0xff]  ;;  %v1647_v53 = vpack.c.bf16 %v473_v48, %v469_v47  ;;  %v596_v57 = vld [vmem:[%s2737_s14 + $0x500] sm:$0xff]  ;;  %v1649_v63 = vpack.c.bf16 %v472_v56, %v468_v55 }
  0xef   : > { %v601_v50 = vld [vmem:[%s2737_s14 + $0x528] sm:$0xff]  ;;  %v600_v58 = vld [vmem:[%s2737_s14 + $0x520] sm:$0xff] }
  0xf0   : > { %v1775_v54 = vpack.c.bf16 %v601_v50, %v597_v49  ;;  %v477_v59 = vld [vmem:[%s2737_s14 + $0x148] sm:$0xff]  ;;  %v1777_v0 = vpack.c.bf16 %v600_v58, %v596_v57  ;;  %v476_v3 = vld [vmem:[%s2737_s14 + $0x140] sm:$0xff] }
  0xf1   : > { %1642 = vmatpush1.bf16.xpose.msra.mxu0 %v1641_v39  ;;  %v481_v60 = vld [vmem:[%s2737_s14 + $0x168] sm:$0xff]  ;;  %v480_v4 = vld [vmem:[%s2737_s14 + $0x160] sm:$0xff] }
  0xf2   : > { %1644 = vmatprep.subr.bf16.mxu0 %v1643_v41  ;;  %v605_v61 = vld [vmem:[%s2737_s14 + $0x548] sm:$0xff]  ;;  %v1651_v1 = vpack.c.bf16 %v481_v60, %v477_v59  ;;  %v604_v5 = vld [vmem:[%s2737_s14 + $0x540] sm:$0xff]  ;;  %v1653_v11 = vpack.c.bf16 %v480_v4, %v476_v3 }
  0xf3   : > { %1770 = vmatpush1.bf16.xpose.msra.mxu1 %v1769_v40  ;;  %v609_v62 = vld [vmem:[%s2737_s14 + $0x568] sm:$0xff]  ;;  %v608_v6 = vld [vmem:[%s2737_s14 + $0x560] sm:$0xff] }
  0xf4   : > { %1772 = vmatprep.subr.bf16.mxu1 %v1771_v42  ;;  %v1779_v2 = vpack.c.bf16 %v609_v62, %v605_v61  ;;  %v485_v7 = vld [vmem:[%s2737_s14 + $0x188] sm:$0xff]  ;;  %v1781_v12 = vpack.c.bf16 %v608_v6, %v604_v5  ;;  %v484_v16 = vld [vmem:[%s2737_s14 + $0x180] sm:$0xff] }
  0xf5   : > { %v489_v8 = vld [vmem:[%s2737_s14 + $0x1a8] sm:$0xff]  ;;  %v488_v17 = vld [vmem:[%s2737_s14 + $0x1a0] sm:$0xff] }
  0xf6   : > { %v613_v9 = vld [vmem:[%s2737_s14 + $0x588] sm:$0xff]  ;;  %v1655_v13 = vpack.c.bf16 %v489_v8, %v485_v7  ;;  %v612_v18 = vld [vmem:[%s2737_s14 + $0x580] sm:$0xff]  ;;  %v1657_v24 = vpack.c.bf16 %v488_v17, %v484_v16 }
  0xf7   : > { %v617_v10 = vld [vmem:[%s2737_s14 + $0x5a8] sm:$0xff]  ;;  %v616_v19 = vld [vmem:[%s2737_s14 + $0x5a0] sm:$0xff] }
  0xf8   : > { %v1783_v14 = vpack.c.bf16 %v617_v10, %v613_v9  ;;  %v405_v15 = vld [vmem:[%s2729_s24 + $0x8] sm:$0xff]  ;;  %v1785_v25 = vpack.c.bf16 %v616_v19, %v612_v18  ;;  %v492_v28 = vld [vmem:[%s2737_s14 + $0x1c0] sm:$0xff] }
  0xf9   : > { %1646 = vmatpush1.bf16.xpose.msra.mxu0 %v1645_v51  ;;  %788 = vmatprep.mubr.f32.mxu0 %v405_v15  ;;  %v493_v20 = vld [vmem:[%s2737_s14 + $0x1c8] sm:$0xff]  ;;  %v496_v29 = vld [vmem:[%s2737_s14 + $0x1e0] sm:$0xff] }
  0xfa   : > { %1648 = vmatprep.subr.bf16.mxu0 %v1647_v53  ;;  %1014 = vmatprep.mubr.f32.mxu1 %v405_v15  ;;  %v497_v21 = vld [vmem:[%s2737_s14 + $0x1e8] sm:$0xff]  ;;  %v620_v30 = vld [vmem:[%s2737_s14 + $0x5c0] sm:$0xff]  ;;  %v1661_v36 = vpack.c.bf16 %v496_v29, %v492_v28 }
  0xfb   : > { %1774 = vmatpush1.bf16.xpose.msra.mxu1 %v1773_v52  ;;  %v621_v22 = vld [vmem:[%s2737_s14 + $0x5c8] sm:$0xff]  ;;  %v1659_v26 = vpack.c.bf16 %v497_v21, %v493_v20  ;;  %v624_v31 = vld [vmem:[%s2737_s14 + $0x5e0] sm:$0xff] }
  0xfc   : > { %1776 = vmatprep.subr.bf16.mxu1 %v1775_v54  ;;  %v625_v23 = vld [vmem:[%s2737_s14 + $0x5e8] sm:$0xff]  ;;  %v1789_v37 = vpack.c.bf16 %v624_v31, %v620_v30  ;;  %v500_v40 = vld [vmem:[%s2737_s14 + $0x200] sm:$0xff] }
  0xfd   : > { %v1787_v27 = vpack.c.bf16 %v625_v23, %v621_v22  ;;  %v501_v32 = vld [vmem:[%s2737_s14 + $0x208] sm:$0xff]  ;;  %v504_v41 = vld [vmem:[%s2737_s14 + $0x220] sm:$0xff] }
  0xfe   : > { %v505_v33 = vld [vmem:[%s2737_s14 + $0x228] sm:$0xff]  ;;  %v628_v42 = vld [vmem:[%s2737_s14 + $0x600] sm:$0xff]  ;;  %v1665_v48 = vpack.c.bf16 %v504_v41, %v500_v40 }
  0xff   : > { %v629_v34 = vld [vmem:[%s2737_s14 + $0x608] sm:$0xff]  ;;  %v1663_v38 = vpack.c.bf16 %v505_v33, %v501_v32  ;;  %v632_v43 = vld [vmem:[%s2737_s14 + $0x620] sm:$0xff] }
 0x100   : > { %v633_v35 = vld [vmem:[%s2737_s14 + $0x628] sm:$0xff]  ;;  %v1793_v49 = vpack.c.bf16 %v632_v43, %v628_v42  ;;  %v508_v52 = vld [vmem:[%s2737_s14 + $0x240] sm:$0xff] }
 0x101   : > { %1650 = vmatpush1.bf16.xpose.msra.mxu0 %v1649_v63  ;;  %v1791_v39 = vpack.c.bf16 %v633_v35, %v629_v34  ;;  %v509_v44 = vld [vmem:[%s2737_s14 + $0x248] sm:$0xff]  ;;  %v512_v53 = vld [vmem:[%s2737_s14 + $0x260] sm:$0xff] }
 0x102   : > { %1652 = vmatprep.subr.bf16.mxu0 %v1651_v1  ;;  %v513_v45 = vld [vmem:[%s2737_s14 + $0x268] sm:$0xff]  ;;  %v636_v54 = vld [vmem:[%s2737_s14 + $0x640] sm:$0xff]  ;;  %v1669_v60 = vpack.c.bf16 %v512_v53, %v508_v52 }
 0x103   : > { %1778 = vmatpush1.bf16.xpose.msra.mxu1 %v1777_v0  ;;  %v637_v46 = vld [vmem:[%s2737_s14 + $0x648] sm:$0xff]  ;;  %v1667_v50 = vpack.c.bf16 %v513_v45, %v509_v44  ;;  %v640_v55 = vld [vmem:[%s2737_s14 + $0x660] sm:$0xff] }
 0x104   : > { %1780 = vmatprep.subr.bf16.mxu1 %v1779_v2  ;;  %v641_v47 = vld [vmem:[%s2737_s14 + $0x668] sm:$0xff]  ;;  %v1797_v61 = vpack.c.bf16 %v640_v55, %v636_v54  ;;  %v516_v0 = vld [vmem:[%s2737_s14 + $0x280] sm:$0xff] }
 0x105   : > { %v1795_v51 = vpack.c.bf16 %v641_v47, %v637_v46  ;;  %v517_v56 = vld [vmem:[%s2737_s14 + $0x288] sm:$0xff]  ;;  %v520_v1 = vld [vmem:[%s2737_s14 + $0x2a0] sm:$0xff] }
 0x106   : > { %v521_v57 = vld [vmem:[%s2737_s14 + $0x2a8] sm:$0xff]  ;;  %v644_v2 = vld [vmem:[%s2737_s14 + $0x680] sm:$0xff]  ;;  %v1673_v8 = vpack.c.bf16 %v520_v1, %v516_v0  ;;  %v439_v0 = vld [vmem:[%s2737_s14 + $0x18] sm:$0xff] }
 0x107   : > { %v645_v58 = vld [vmem:[%s2737_s14 + $0x688] sm:$0xff]  ;;  %v1671_v62 = vpack.c.bf16 %v521_v57, %v517_v56  ;;  %v648_v3 = vld [vmem:[%s2737_s14 + $0x6a0] sm:$0xff]  ;;  %v443_v1 = vld [vmem:[%s2737_s14 + $0x38] sm:$0xff] }
 0x108   : > { %v649_v59 = vld [vmem:[%s2737_s14 + $0x6a8] sm:$0xff]  ;;  %v1801_v9 = vpack.c.bf16 %v648_v3, %v644_v2  ;;  %v656_v15 = vld [vmem:[%s2737_s14 + $0x6e0] sm:$0xff]  ;;  %v567_v2 = vld [vmem:[%s2737_s14 + $0x418] sm:$0xff] }
 0x109   : > { %1654 = vmatpush1.bf16.xpose.msra.mxu0 %v1653_v11  ;;  %v1799_v63 = vpack.c.bf16 %v649_v59, %v645_v58  ;;  %v525_v4 = vld [vmem:[%s2737_s14 + $0x2c8] sm:$0xff]  ;;  %v571_v3 = vld [vmem:[%s2737_s14 + $0x438] sm:$0xff] }
 0x10a   : > { %1656 = vmatprep.subr.bf16.mxu0 %v1655_v13  ;;  %v529_v5 = vld [vmem:[%s2737_s14 + $0x2e8] sm:$0xff]  ;;  %v528_v13 = vld [vmem:[%s2737_s14 + $0x2e0] sm:$0xff] }
 0x10b   : > { %1782 = vmatpush1.bf16.xpose.msra.mxu1 %v1781_v12  ;;  %v653_v6 = vld [vmem:[%s2737_s14 + $0x6c8] sm:$0xff]  ;;  %v1675_v10 = vpack.c.bf16 %v529_v5, %v525_v4  ;;  %v524_v12 = vld [vmem:[%s2737_s14 + $0x2c0] sm:$0xff] }
 0x10c   : > { %1784 = vmatprep.subr.bf16.mxu1 %v1783_v14  ;;  %v657_v7 = vld [vmem:[%s2737_s14 + $0x6e8] sm:$0xff]  ;;  %v652_v14 = vld [vmem:[%s2737_s14 + $0x6c0] sm:$0xff]  ;;  %v1677_v20 = vpack.c.bf16 %v528_v13, %v524_v12  ;;  %v447_v12 = vld [vmem:[%s2737_s14 + $0x58] sm:$0xff] }
 0x10d   : > { %v1803_v11 = vpack.c.bf16 %v657_v7, %v653_v6  ;;  %v533_v16 = vld [vmem:[%s2737_s14 + $0x308] sm:$0xff]  ;;  %v1805_v21 = vpack.c.bf16 %v656_v15, %v652_v14  ;;  %v1695_v6 = vpack.c.bf16 %v443_v1, %v439_v0  ;;  %v1823_v7 = vpack.c.bf16 %v571_v3, %v567_v2  ;;  %v451_v13 = vld [vmem:[%s2737_s14 + $0x78] sm:$0xff]  ;;  %v428_v1 = vld [vmem:[%s2729_s24 + $0xc0] sm:$0xff] }
 0x10e   : > { %v537_v17 = vld [vmem:[%s2737_s14 + $0x328] sm:$0xff]  ;;  %v575_v14 = vld [vmem:[%s2737_s14 + $0x458] sm:$0xff] }
 0x10f   : > { %v661_v18 = vld [vmem:[%s2737_s14 + $0x708] sm:$0xff]  ;;  %v1679_v22 = vpack.c.bf16 %v537_v17, %v533_v16  ;;  %v579_v15 = vld [vmem:[%s2737_s14 + $0x478] sm:$0xff]  ;;  %v404_v16 = vld [vmem:[%s2729_s24] sm:$0xff] }
 0x110   : > { %v665_v19 = vld [vmem:[%s2737_s14 + $0x728] sm:$0xff] }
 0x111   : > { %1658 = vmatpush1.bf16.xpose.msra.mxu0 %v1657_v24  ;;  %v1807_v23 = vpack.c.bf16 %v665_v19, %v661_v18  ;;  %v532_v24 = vld [vmem:[%s2737_s14 + $0x300] sm:$0xff]  ;;  %v541_v28 = vld [vmem:[%s2737_s14 + $0x348] sm:$0xff]  ;;  %v1699_v19 = vpack.c.bf16 %v451_v13, %v447_v12  ;;  %v479_v12 = vld [vmem:[%s2737_s14 + $0x158] sm:$0xff] }
 0x112   : > { %1660 = vmatprep.subr.bf16.mxu0 %v1659_v26  ;;  %v660_v26 = vld [vmem:[%s2737_s14 + $0x700] sm:$0xff]  ;;  %v545_v29 = vld [vmem:[%s2737_s14 + $0x368] sm:$0xff]  ;;  %v483_v13 = vld [vmem:[%s2737_s14 + $0x178] sm:$0xff] }
 0x113   : > { %1786 = vmatpush1.bf16.xpose.msra.mxu1 %v1785_v25  ;;  %v536_v25 = vld [vmem:[%s2737_s14 + $0x320] sm:$0xff]  ;;  %v669_v30 = vld [vmem:[%s2737_s14 + $0x748] sm:$0xff]  ;;  %v1683_v34 = vpack.c.bf16 %v545_v29, %v541_v28  ;;  %v455_v28 = vld [vmem:[%s2737_s14 + $0x98] sm:$0xff] }
 0x114   : > { %1788 = vmatprep.subr.bf16.mxu1 %v1787_v27  ;;  %v664_v27 = vld [vmem:[%s2737_s14 + $0x720] sm:$0xff]  ;;  %v673_v31 = vld [vmem:[%s2737_s14 + $0x768] sm:$0xff]  ;;  %v1681_v32 = vpack.c.bf16 %v536_v25, %v532_v24  ;;  %v450_v24 = vld [vmem:[%s2737_s14 + $0x70] sm:$0xff] }
 0x115   : > { %v1809_v33 = vpack.c.bf16 %v664_v27, %v660_v26  ;;  %v1811_v35 = vpack.c.bf16 %v673_v31, %v669_v30  ;;  %v549_v40 = vld [vmem:[%s2737_s14 + $0x388] sm:$0xff]  ;;  %v574_v25 = vld [vmem:[%s2737_s14 + $0x450] sm:$0xff]  ;;  %v459_v29 = vld [vmem:[%s2737_s14 + $0xb8] sm:$0xff] }
 0x116   : > { %v553_v41 = vld [vmem:[%s2737_s14 + $0x3a8] sm:$0xff]  ;;  %v578_v27 = vld [vmem:[%s2737_s14 + $0x470] sm:$0xff]  ;;  %v583_v30 = vld [vmem:[%s2737_s14 + $0x498] sm:$0xff] }
 0x117   : > { %v677_v42 = vld [vmem:[%s2737_s14 + $0x788] sm:$0xff]  ;;  %v1687_v46 = vpack.c.bf16 %v553_v41, %v549_v40  ;;  %v587_v31 = vld [vmem:[%s2737_s14 + $0x4b8] sm:$0xff]  ;;  %v458_v40 = vld [vmem:[%s2737_s14 + $0xb0] sm:$0xff] }
 0x118   : > { %v681_v43 = vld [vmem:[%s2737_s14 + $0x7a8] sm:$0xff]  ;;  %v582_v41 = vld [vmem:[%s2737_s14 + $0x490] sm:$0xff] }
 0x119   : > { %1662 = vmatpush1.bf16.xpose.msra.mxu0 %v1661_v36  ;;  %v540_v36 = vld [vmem:[%s2737_s14 + $0x340] sm:$0xff]  ;;  %v1815_v47 = vpack.c.bf16 %v681_v43, %v677_v42  ;;  %v557_v52 = vld [vmem:[%s2737_s14 + $0x3c8] sm:$0xff]  ;;  %v586_v43 = vld [vmem:[%s2737_s14 + $0x4b0] sm:$0xff] }
 0x11a   : > { %1664 = vmatprep.subr.bf16.mxu0 %v1663_v38  ;;  %v668_v38 = vld [vmem:[%s2737_s14 + $0x740] sm:$0xff]  ;;  %v561_v53 = vld [vmem:[%s2737_s14 + $0x3e8] sm:$0xff] }
 0x11b   : > { %1790 = vmatpush1.bf16.xpose.msra.mxu1 %v1789_v37  ;;  %v544_v37 = vld [vmem:[%s2737_s14 + $0x360] sm:$0xff]  ;;  %v685_v54 = vld [vmem:[%s2737_s14 + $0x7c8] sm:$0xff]  ;;  %v1691_v58 = vpack.c.bf16 %v561_v53, %v557_v52 }
 0x11c   : > { %1792 = vmatprep.subr.bf16.mxu1 %v1791_v39  ;;  %v672_v39 = vld [vmem:[%s2737_s14 + $0x760] sm:$0xff]  ;;  %v1685_v44 = vpack.c.bf16 %v544_v37, %v540_v36  ;;  %v689_v55 = vld [vmem:[%s2737_s14 + $0x7e8] sm:$0xff]  ;;  %v1831_v36 = vpack.c.bf16 %v587_v31, %v583_v30 }
 0x11d   : > { %v1813_v45 = vpack.c.bf16 %v672_v39, %v668_v38  ;;  %v1819_v59 = vpack.c.bf16 %v689_v55, %v685_v54  ;;  %v413_v26 = vld [vmem:[%s2729_s24 + $0x48] sm:$0xff]  ;;  %v454_v38 = vld [vmem:[%s2737_s14 + $0x90] sm:$0xff]  ;;  %v416_v39 = vld [vmem:[%s2729_s24 + $0x60] sm:$0xff] }
 0x11e   : > { %v417_v37 = vld [vmem:[%s2729_s24 + $0x68] sm:$0xff]  ;;  %v462_v54 = vld [vmem:[%s2737_s14 + $0xd0] sm:$0xff]  ;;  %v424_v55 = vld [vmem:[%s2729_s24 + $0xa0] sm:$0xff] }
 0x11f   : > { %v421_v42 = vld [vmem:[%s2729_s24 + $0x88] sm:$0xff] }
 0x120   : > { %v425_v53 = vld [vmem:[%s2729_s24 + $0xa8] sm:$0xff] }
 0x121   : > { %1666 = vmatpush1.bf16.xpose.msra.mxu0 %v1665_v48  ;;  %v548_v48 = vld [vmem:[%s2737_s14 + $0x380] sm:$0xff] }
 0x122   : > { %1668 = vmatprep.subr.bf16.mxu0 %v1667_v50  ;;  %v676_v50 = vld [vmem:[%s2737_s14 + $0x780] sm:$0xff] }
 0x123   : > { %1794 = vmatpush1.bf16.xpose.msra.mxu1 %v1793_v49  ;;  %v552_v49 = vld [vmem:[%s2737_s14 + $0x3a0] sm:$0xff] }
 0x124   : > { %1796 = vmatprep.subr.bf16.mxu1 %v1795_v51  ;;  %v680_v51 = vld [vmem:[%s2737_s14 + $0x7a0] sm:$0xff]  ;;  %v1689_v56 = vpack.c.bf16 %v552_v49, %v548_v48  ;;  %v1705_v48 = vpack.c.bf16 %v458_v40, %v454_v38  ;;  %v623_v38 = vld [vmem:[%s2737_s14 + $0x5d8] sm:$0xff] }
 0x125   : > { %v1817_v57 = vpack.c.bf16 %v680_v51, %v676_v50  ;;  %v420_v49 = vld [vmem:[%s2729_s24 + $0x80] sm:$0xff]  ;;  %v1833_v50 = vpack.c.bf16 %v586_v43, %v582_v41 }
 0x129   : > { %1670 = vmatpush1.bf16.xpose.msra.mxu0 %v1669_v60  ;;  %v556_v60 = vld [vmem:[%s2737_s14 + $0x3c0] sm:$0xff] }
 0x12a   : > { %1672 = vmatprep.subr.bf16.mxu0 %v1671_v62  ;;  %v684_v62 = vld [vmem:[%s2737_s14 + $0x7c0] sm:$0xff] }
 0x12b   : > { %1798 = vmatpush1.bf16.xpose.msra.mxu1 %v1797_v61  ;;  %v560_v61 = vld [vmem:[%s2737_s14 + $0x3e0] sm:$0xff] }
 0x12c   : > { %1800 = vmatprep.subr.bf16.mxu1 %v1799_v63  ;;  %v688_v63 = vld [vmem:[%s2737_s14 + $0x7e0] sm:$0xff]  ;;  %v1693_v4 = vpack.c.bf16 %v560_v61, %v556_v60  ;;  %v471_v60 = vld [vmem:[%s2737_s14 + $0x118] sm:$0xff] }
 0x12d   : > { %v1821_v5 = vpack.c.bf16 %v688_v63, %v684_v62  ;;  %v475_v61 = vld [vmem:[%s2737_s14 + $0x138] sm:$0xff] }
 0x12e   : > { %v599_v62 = vld [vmem:[%s2737_s14 + $0x518] sm:$0xff]  ;;  %v1711_v3 = vpack.c.bf16 %v475_v61, %v471_v60 }
 0x12f   : > { %v603_v63 = vld [vmem:[%s2737_s14 + $0x538] sm:$0xff] }
 0x130   : > { %v511_v60 = vld [vmem:[%s2737_s14 + $0x258] sm:$0xff] }
 0x131   : > { %1674 = vmatpush1.bf16.xpose.msra.mxu0 %v1673_v8  ;;  %v438_v8 = vld [vmem:[%s2737_s14 + $0x10] sm:$0xff]  ;;  %v515_v61 = vld [vmem:[%s2737_s14 + $0x278] sm:$0xff] }
 0x132   : > { %1676 = vmatprep.subr.bf16.mxu0 %v1675_v10  ;;  %v566_v10 = vld [vmem:[%s2737_s14 + $0x410] sm:$0xff] }
 0x133   : > { %1802 = vmatpush1.bf16.xpose.msra.mxu1 %v1801_v9  ;;  %v442_v9 = vld [vmem:[%s2737_s14 + $0x30] sm:$0xff] }
 0x134   : > { %1804 = vmatprep.subr.bf16.mxu1 %v1803_v11  ;;  %v570_v11 = vld [vmem:[%s2737_s14 + $0x430] sm:$0xff]  ;;  %v1697_v17 = vpack.c.bf16 %v442_v9, %v438_v8 }
 0x135   : > { %v1825_v18 = vpack.c.bf16 %v570_v11, %v566_v10  ;;  %v474_v8 = vld [vmem:[%s2737_s14 + $0x130] sm:$0xff]  ;;  %v407_v10 = vld [vmem:[%s2729_s24 + $0x18] sm:$0xff] }
 0x136   : > { %v598_v9 = vld [vmem:[%s2737_s14 + $0x510] sm:$0xff] }
 0x137   : > { %v602_v11 = vld [vmem:[%s2737_s14 + $0x530] sm:$0xff] }
 0x139   : > { %1678 = vmatpush1.bf16.xpose.msra.mxu0 %v1677_v20  ;;  %v1827_v20 = vpack.c.bf16 %v579_v15, %v575_v14  ;;  %v607_v14 = vld [vmem:[%s2737_s14 + $0x558] sm:$0xff] }
 0x13a   : > { %1680 = vmatprep.subr.bf16.mxu0 %v1679_v22  ;;  %v446_v22 = vld [vmem:[%s2737_s14 + $0x50] sm:$0xff]  ;;  %v611_v15 = vld [vmem:[%s2737_s14 + $0x578] sm:$0xff] }
 0x13b   : > { %1806 = vmatpush1.bf16.xpose.msra.mxu1 %v1805_v21  ;;  %v409_v21 = vld [vmem:[%s2729_s24 + $0x28] sm:$0xff] }
 0x13c   : > { %1808 = vmatprep.subr.bf16.mxu1 %v1807_v23  ;;  %v408_v23 = vld [vmem:[%s2729_s24 + $0x20] sm:$0xff] }
 0x141   : > { %1682 = vmatpush1.bf16.xpose.msra.mxu0 %v1681_v32  ;;  %v1701_v32 = vpack.c.bf16 %v450_v24, %v446_v22  ;;  %v606_v22 = vld [vmem:[%s2737_s14 + $0x550] sm:$0xff]  ;;  %v487_v24 = vld [vmem:[%s2737_s14 + $0x198] sm:$0xff] }
 0x142   : > { %1684 = vmatprep.subr.bf16.mxu0 %v1683_v34  ;;  %v1829_v34 = vpack.c.bf16 %v578_v27, %v574_v25  ;;  %v491_v25 = vld [vmem:[%s2737_s14 + $0x1b8] sm:$0xff] }
 0x143   : > { %1810 = vmatpush1.bf16.xpose.msra.mxu1 %v1809_v33  ;;  %v412_v33 = vld [vmem:[%s2729_s24 + $0x40] sm:$0xff]  ;;  %v619_v27 = vld [vmem:[%s2737_s14 + $0x5b8] sm:$0xff]  ;;  %v1719_v30 = vpack.c.bf16 %v491_v25, %v487_v24 }
 0x144   : > { %1812 = vmatprep.subr.bf16.mxu1 %v1811_v35  ;;  %v1703_v35 = vpack.c.bf16 %v459_v29, %v455_v28 }
 0x149   : > { %1686 = vmatpush1.bf16.xpose.msra.mxu0 %v1685_v44  ;;  %v463_v44 = vld [vmem:[%s2737_s14 + $0xd8] sm:$0xff] }
 0x14a   : > { %1688 = vmatprep.subr.bf16.mxu0 %v1687_v46  ;;  %v591_v46 = vld [vmem:[%s2737_s14 + $0x4d8] sm:$0xff] }
 0x14b   : > { %1814 = vmatpush1.bf16.xpose.msra.mxu1 %v1813_v45  ;;  %v467_v45 = vld [vmem:[%s2737_s14 + $0xf8] sm:$0xff] }
 0x14c   : > { %1816 = vmatprep.subr.bf16.mxu1 %v1815_v47  ;;  %v595_v47 = vld [vmem:[%s2737_s14 + $0x4f8] sm:$0xff]  ;;  %v1707_v51 = vpack.c.bf16 %v467_v45, %v463_v44  ;;  %v494_v44 = vld [vmem:[%s2737_s14 + $0x1d0] sm:$0xff] }
 0x14d   : > { %v1835_v52 = vpack.c.bf16 %v595_v47, %v591_v46  ;;  %v498_v45 = vld [vmem:[%s2737_s14 + $0x1f0] sm:$0xff] }
 0x14e   : > { %v622_v46 = vld [vmem:[%s2737_s14 + $0x5d0] sm:$0xff] }
 0x14f   : > { %v626_v47 = vld [vmem:[%s2737_s14 + $0x5f0] sm:$0xff] }
 0x151   : > { %1690 = vmatpush1.bf16.xpose.msra.mxu0 %v1689_v56  ;;  %v466_v56 = vld [vmem:[%s2737_s14 + $0xf0] sm:$0xff] }
 0x152   : > { %1692 = vmatprep.subr.bf16.mxu0 %v1691_v58  ;;  %v429_v58 = vld [vmem:[%s2729_s24 + $0xc8] sm:$0xff]  ;;  %v1709_v0 = vpack.c.bf16 %v466_v56, %v462_v54  ;;  %v502_v56 = vld [vmem:[%s2737_s14 + $0x210] sm:$0xff] }
 0x153   : > { %1818 = vmatpush1.bf16.xpose.msra.mxu1 %v1817_v57  ;;  %v590_v57 = vld [vmem:[%s2737_s14 + $0x4d0] sm:$0xff] }
 0x154   : > { %1820 = vmatprep.subr.bf16.mxu1 %v1819_v59  ;;  %v594_v59 = vld [vmem:[%s2737_s14 + $0x4f0] sm:$0xff] }
 0x155   : > { %v1837_v2 = vpack.c.bf16 %v594_v59, %v590_v57  ;;  %v506_v57 = vld [vmem:[%s2737_s14 + $0x230] sm:$0xff] }
 0x156   : > { %v634_v59 = vld [vmem:[%s2737_s14 + $0x630] sm:$0xff] }
 0x159   : > { %1694 = vmatpush1.bf16.xpose.msra.mxu0 %v1693_v4  ;;  %v1839_v4 = vpack.c.bf16 %v603_v63, %v599_v62  ;;  %v639_v62 = vld [vmem:[%s2737_s14 + $0x658] sm:$0xff] }
 0x15a   : > { %1696 = vmatprep.subr.bf16.mxu0 %v1695_v6  ;;  %v470_v6 = vld [vmem:[%s2737_s14 + $0x110] sm:$0xff]  ;;  %v643_v63 = vld [vmem:[%s2737_s14 + $0x678] sm:$0xff] }
 0x15b   : > { %1822 = vmatpush1.bf16.xpose.msra.mxu1 %v1821_v5  ;;  %v433_v5 = vld [vmem:[%s2729_s24 + $0xe8] sm:$0xff] }
 0x15c   : > { %1824 = vmatprep.subr.bf16.mxu1 %v1823_v7  ;;  %v432_v7 = vld [vmem:[%s2729_s24 + $0xe0] sm:$0xff] }
 0x160   : > { %789 = vmatmul.mubr.f32.vlgmr.msra.gmra.mrb[0].mxu0 %v404_v16 }
 0x161   : > { %1698 = vmatpush1.bf16.xpose.msra.mxu0 %v1697_v17  ;;  %794 = vmatprep.mubr.f32.mxu0 %v409_v21  ;;  %v1841_v17 = vpack.c.bf16 %v602_v11, %v598_v9  ;;  %v523_v9 = vld [vmem:[%s2737_s14 + $0x2b8] sm:$0xff] }
 0x162   : > { %1015 = vmatmul.mubr.f32.vlgmr.msra.gmra.mrb[0].mxu1 %v404_v16  ;;  %1700 = vmatprep.subr.bf16.mxu0 %v1699_v19  ;;  %v1713_v16 = vpack.c.bf16 %v474_v8, %v470_v6  ;;  %v1843_v19 = vpack.c.bf16 %v611_v15, %v607_v14  ;;  %v638_v6 = vld [vmem:[%s2737_s14 + $0x650] sm:$0xff]  ;;  %v519_v8 = vld [vmem:[%s2737_s14 + $0x298] sm:$0xff] }
 0x163   : > { %1826 = vmatpush1.bf16.xpose.msra.mxu1 %v1825_v18  ;;  %1020 = vmatprep.mubr.f32.mxu1 %v409_v21  ;;  %v1715_v18 = vpack.c.bf16 %v483_v13, %v479_v12  ;;  %v482_v21 = vld [vmem:[%s2737_s14 + $0x170] sm:$0xff]  ;;  %v651_v11 = vld [vmem:[%s2737_s14 + $0x6b8] sm:$0xff]  ;;  %v1735_v14 = vpack.c.bf16 %v523_v9, %v519_v8 }
 0x164   : > { %1828 = vmatprep.subr.bf16.mxu1 %v1827_v20  ;;  %795 = vmatmul.mubr.f32.gmra.mrb[2].mxu0 %v408_v23  ;;  %v478_v20 = vld [vmem:[%s2737_s14 + $0x150] sm:$0xff] }
 0x165   : > { %800 = vmatprep.mubr.f32.mxu0 %v413_v26  ;;  %v1717_v28 = vpack.c.bf16 %v482_v21, %v478_v20  ;;  %v527_v20 = vld [vmem:[%s2737_s14 + $0x2d8] sm:$0xff] }
 0x166   : > { %1021 = vmatmul.mubr.f32.gmra.mrb[2].mxu1 %v408_v23  ;;  %v610_v23 = vld [vmem:[%s2737_s14 + $0x570] sm:$0xff]  ;;  %v531_v21 = vld [vmem:[%s2737_s14 + $0x2f8] sm:$0xff] }
 0x167   : > { %1026 = vmatprep.mubr.f32.mxu1 %v413_v26  ;;  %v615_v26 = vld [vmem:[%s2737_s14 + $0x598] sm:$0xff]  ;;  %v1845_v29 = vpack.c.bf16 %v610_v23, %v606_v22 }
 0x168   : > { %801 = vmatmul.mubr.f32.gmra.mrb[4].mxu0 %v412_v33  ;;  %v1847_v31 = vpack.c.bf16 %v619_v27, %v615_v26  ;;  %v655_v22 = vld [vmem:[%s2737_s14 + $0x6d8] sm:$0xff]  ;;  %v1739_v26 = vpack.c.bf16 %v531_v21, %v527_v20  ;;  %v410_v20 = vld [vmem:[%s2729_s24 + $0x30] sm:$0xff] }
 0x169   : > { %1702 = vmatpush1.bf16.xpose.msra.mxu0 %v1701_v32  ;;  %806 = vmatprep.mubr.f32.mxu0 %v417_v37  ;;  %v486_v32 = vld [vmem:[%s2737_s14 + $0x190] sm:$0xff]  ;;  %v659_v23 = vld [vmem:[%s2737_s14 + $0x6f8] sm:$0xff] }
 0x16a   : > { %1027 = vmatmul.mubr.f32.gmra.mrb[4].mxu1 %v412_v33  ;;  %1704 = vmatprep.subr.bf16.mxu0 %v1703_v35  ;;  %v490_v33 = vld [vmem:[%s2737_s14 + $0x1b0] sm:$0xff]  ;;  %v1867_v27 = vpack.c.bf16 %v659_v23, %v655_v22  ;;  %v415_v21 = vld [vmem:[%s2729_s24 + $0x58] sm:$0xff] }
 0x16b   : > { %1830 = vmatpush1.bf16.xpose.msra.mxu1 %v1829_v34  ;;  %1032 = vmatprep.mubr.f32.mxu1 %v417_v37  ;;  %v614_v34 = vld [vmem:[%s2737_s14 + $0x590] sm:$0xff]  ;;  %v499_v37 = vld [vmem:[%s2737_s14 + $0x1f8] sm:$0xff]  ;;  %v1721_v40 = vpack.c.bf16 %v490_v33, %v486_v32 }
 0x16c   : > { %1832 = vmatprep.subr.bf16.mxu1 %v1831_v36  ;;  %807 = vmatmul.mubr.f32.gmra.mrb[6].mxu0 %v416_v39  ;;  %v618_v35 = vld [vmem:[%s2737_s14 + $0x5b0] sm:$0xff]  ;;  %v495_v36 = vld [vmem:[%s2737_s14 + $0x1d8] sm:$0xff] }
 0x16d   : > { %812 = vmatprep.mubr.f32.mxu0 %v421_v42  ;;  %v1849_v41 = vpack.c.bf16 %v618_v35, %v614_v34  ;;  %v535_v32 = vld [vmem:[%s2737_s14 + $0x318] sm:$0xff]  ;;  %v414_v22 = vld [vmem:[%s2729_s24 + $0x50] sm:$0xff] }
 0x16e   : > { %1033 = vmatmul.mubr.f32.gmra.mrb[6].mxu1 %v416_v39  ;;  %v627_v39 = vld [vmem:[%s2737_s14 + $0x5f8] sm:$0xff] }
 0x16f   : > { %1038 = vmatprep.mubr.f32.mxu1 %v421_v42  ;;  %v1723_v42 = vpack.c.bf16 %v499_v37, %v495_v36  ;;  %v1851_v43 = vpack.c.bf16 %v627_v39, %v623_v38  ;;  %v539_v33 = vld [vmem:[%s2737_s14 + $0x338] sm:$0xff] }
 0x170   : > { %813 = vmatmul.mubr.f32.gmra.mrb[8].mxu0 %v420_v49  ;;  %v663_v34 = vld [vmem:[%s2737_s14 + $0x718] sm:$0xff]  ;;  %v1743_v38 = vpack.c.bf16 %v539_v33, %v535_v32  ;;  %v434_v32 = vld [vmem:[%s2729_s24 + $0xf0] sm:$0xff] }
 0x171   : > { %1706 = vmatpush1.bf16.xpose.msra.mxu0 %v1705_v48  ;;  %818 = vmatprep.mubr.f32.mxu0 %v425_v53  ;;  %v503_v48 = vld [vmem:[%s2737_s14 + $0x218] sm:$0xff]  ;;  %v692_v33 = vld [vmem:[%s2761_s15] sm:$0xff] }
 0x172   : > { %1039 = vmatmul.mubr.f32.gmra.mrb[8].mxu1 %v420_v49  ;;  %1708 = vmatprep.subr.bf16.mxu0 %v1707_v51  ;;  %v507_v49 = vld [vmem:[%s2737_s14 + $0x238] sm:$0xff] }
 0x173   : > { %1834 = vmatpush1.bf16.xpose.msra.mxu1 %v1833_v50  ;;  %1044 = vmatprep.mubr.f32.mxu1 %v425_v53  ;;  %v631_v50 = vld [vmem:[%s2737_s14 + $0x618] sm:$0xff]  ;;  %v1853_v53 = vpack.c.bf16 %v626_v47, %v622_v46  ;;  %v1727_v54 = vpack.c.bf16 %v507_v49, %v503_v48 }
 0x174   : > { %1836 = vmatprep.subr.bf16.mxu1 %v1835_v52  ;;  %819 = vmatmul.mubr.f32.gmra.mrb[10].mxu0 %v424_v55  ;;  %v635_v51 = vld [vmem:[%s2737_s14 + $0x638] sm:$0xff]  ;;  %v1725_v52 = vpack.c.bf16 %v498_v45, %v494_v44 }
 0x175   : > { %824 = vmatprep.mubr.f32.mxu0 %v429_v58  ;;  %v667_v35 = vld [vmem:[%s2737_s14 + $0x738] sm:$0xff] }
 0x176   : > { %1045 = vmatmul.mubr.f32.gmra.mrb[10].mxu1 %v424_v55  ;;  %v1855_v55 = vpack.c.bf16 %v635_v51, %v631_v50  ;;  %v1871_v39 = vpack.c.bf16 %v667_v35, %v663_v34  ;;  %v543_v44 = vld [vmem:[%s2737_s14 + $0x358] sm:$0xff]  ;;  %v694_v34 = vld [vmem:[%s2761_s15 + $0x10] sm:$0xff] }
 0x177   : > { %1050 = vmatprep.mubr.f32.mxu1 %v429_v58  ;;  %v630_v58 = vld [vmem:[%s2737_s14 + $0x610] sm:$0xff]  ;;  %v547_v45 = vld [vmem:[%s2737_s14 + $0x378] sm:$0xff] }
 0x178   : > { %825 = vmatmul.mubr.f32.gmra.mrb[12].mxu0 %v428_v1  ;;  %v671_v46 = vld [vmem:[%s2737_s14 + $0x758] sm:$0xff]  ;;  %v1747_v50 = vpack.c.bf16 %v547_v45, %v543_v44  ;;  %v696_v44 = vld [vmem:[%s2761_s15 + $0x20] sm:$0xff] }
 0x179   : > { %1710 = vmatpush1.bf16.xpose.msra.mxu0 %v1709_v0  ;;  %830 = vmatprep.mubr.f32.mxu0 %v433_v5  ;;  %v1729_v0 = vpack.c.bf16 %v506_v57, %v502_v56  ;;  %v675_v47 = vld [vmem:[%s2737_s14 + $0x778] sm:$0xff] }
 0x17a   : > { %1051 = vmatmul.mubr.f32.gmra.mrb[12].mxu1 %v428_v1  ;;  %1712 = vmatprep.subr.bf16.mxu0 %v1711_v3  ;;  %v1857_v1 = vpack.c.bf16 %v634_v59, %v630_v58  ;;  %v1859_v3 = vpack.c.bf16 %v643_v63, %v639_v62  ;;  %v1875_v51 = vpack.c.bf16 %v675_v47, %v671_v46  ;;  %v551_v56 = vld [vmem:[%s2737_s14 + $0x398] sm:$0xff]  ;;  %v698_v46 = vld [vmem:[%s2761_s15 + $0x30] sm:$0xff] }
 0x17b   : > { %1838 = vmatpush1.bf16.xpose.msra.mxu1 %v1837_v2  ;;  %1056 = vmatprep.mubr.f32.mxu1 %v433_v5  ;;  %v1731_v2 = vpack.c.bf16 %v515_v61, %v511_v60  ;;  %v514_v5 = vld [vmem:[%s2737_s14 + $0x270] sm:$0xff]  ;;  %v555_v57 = vld [vmem:[%s2737_s14 + $0x3b8] sm:$0xff] }
 0x17c   : > { %1840 = vmatprep.subr.bf16.mxu1 %v1839_v4  ;;  %831 = vmatmul.mubr.f32.gmra.mrb[14].mxu0 %v432_v7  ;;  %v510_v4 = vld [vmem:[%s2737_s14 + $0x250] sm:$0xff]  ;;  %v679_v58 = vld [vmem:[%s2737_s14 + $0x798] sm:$0xff]  ;;  %v1751_v62 = vpack.c.bf16 %v555_v57, %v551_v56 }
 0x17d   : > { %901 = vmatprep.mubr.f32.mxu0 %v407_v10  ;;  %v1733_v12 = vpack.c.bf16 %v514_v5, %v510_v4  ;;  %v683_v59 = vld [vmem:[%s2737_s14 + $0x7b8] sm:$0xff]  ;;  %v700_v56 = vld [vmem:[%s2761_s15 + $0x40] sm:$0xff] }
 0x17e   : > { %1057 = vmatmul.mubr.f32.gmra.mrb[14].mxu1 %v432_v7  ;;  %v642_v7 = vld [vmem:[%s2737_s14 + $0x670] sm:$0xff]  ;;  %v1879_v63 = vpack.c.bf16 %v683_v59, %v679_v58  ;;  %v559_v4 = vld [vmem:[%s2737_s14 + $0x3d8] sm:$0xff]  ;;  %v702_v58 = vld [vmem:[%s2761_s15 + $0x50] sm:$0xff] }
 0x17f   : > { %1127 = vmatprep.mubr.f32.mxu1 %v407_v10  ;;  %v647_v10 = vld [vmem:[%s2737_s14 + $0x698] sm:$0xff]  ;;  %v1861_v13 = vpack.c.bf16 %v642_v7, %v638_v6 }
 0x180   : > { %v1863_v15 = vpack.c.bf16 %v651_v11, %v647_v10  ;;  %v563_v5 = vld [vmem:[%s2737_s14 + $0x3f8] sm:$0xff] }
 0x181   : > { %1714 = vmatpush1.bf16.xpose.msra.mxu0 %v1713_v16  ;;  %v518_v16 = vld [vmem:[%s2737_s14 + $0x290] sm:$0xff]  ;;  %v687_v6 = vld [vmem:[%s2737_s14 + $0x7d8] sm:$0xff]  ;;  %v1755_v10 = vpack.c.bf16 %v563_v5, %v559_v4 }
 0x182   : > { %1716 = vmatprep.subr.bf16.mxu0 %v1715_v18  ;;  %v646_v18 = vld [vmem:[%s2737_s14 + $0x690] sm:$0xff]  ;;  %v691_v7 = vld [vmem:[%s2737_s14 + $0x7f8] sm:$0xff] }
 0x183   : > { %1842 = vmatpush1.bf16.xpose.msra.mxu1 %v1841_v17  ;;  %v522_v17 = vld [vmem:[%s2737_s14 + $0x2b0] sm:$0xff]  ;;  %v1883_v11 = vpack.c.bf16 %v691_v7, %v687_v6  ;;  %v419_v23 = vld [vmem:[%s2729_s24 + $0x78] sm:$0xff]  ;;  %v706_v6 = vld [vmem:[%s2761_s15 + $0x70] sm:$0xff] }
 0x184   : > { %1844 = vmatprep.subr.bf16.mxu1 %v1843_v19  ;;  %v650_v19 = vld [vmem:[%s2737_s14 + $0x6b0] sm:$0xff]  ;;  %v1737_v24 = vpack.c.bf16 %v522_v17, %v518_v16  ;;  %v693_v35 = vld [vmem:[%s2761_s15 + $0x8] sm:$0xff] }
 0x185   : > { %v1865_v25 = vpack.c.bf16 %v650_v19, %v646_v18  ;;  %v406_v18 = vld [vmem:[%s2729_s24 + $0x10] sm:$0xff]  ;;  %v411_v19 = vld [vmem:[%s2729_s24 + $0x38] sm:$0xff] }
 0x186   : > { %v697_v47 = vld [vmem:[%s2761_s15 + $0x28] sm:$0xff]  ;;  %v704_v4 = vld [vmem:[%s2761_s15 + $0x60] sm:$0xff] }
 0x187   : > { %v701_v59 = vld [vmem:[%s2761_s15 + $0x48] sm:$0xff] }
 0x188   : > { %v705_v7 = vld [vmem:[%s2761_s15 + $0x68] sm:$0xff] }
 0x189   : > { %1718 = vmatpush1.bf16.xpose.msra.mxu0 %v1717_v28  ;;  %v526_v28 = vld [vmem:[%s2737_s14 + $0x2d0] sm:$0xff] }
 0x18a   : > { %1720 = vmatprep.subr.bf16.mxu0 %v1719_v30  ;;  %v654_v30 = vld [vmem:[%s2737_s14 + $0x6d0] sm:$0xff] }
 0x18b   : > { %1846 = vmatpush1.bf16.xpose.msra.mxu1 %v1845_v29  ;;  %v530_v29 = vld [vmem:[%s2737_s14 + $0x2f0] sm:$0xff] }
 0x18c   : > { %1848 = vmatprep.subr.bf16.mxu1 %v1847_v31  ;;  %v658_v31 = vld [vmem:[%s2737_s14 + $0x6f0] sm:$0xff]  ;;  %v1741_v36 = vpack.c.bf16 %v530_v29, %v526_v28  ;;  %v431_v29 = vld [vmem:[%s2729_s24 + $0xd8] sm:$0xff] }
 0x18d   : > { %v1869_v37 = vpack.c.bf16 %v658_v31, %v654_v30  ;;  %v426_v28 = vld [vmem:[%s2729_s24 + $0xb0] sm:$0xff]  ;;  %v435_v31 = vld [vmem:[%s2729_s24 + $0xf8] sm:$0xff] }
 0x18e   : > { %v430_v30 = vld [vmem:[%s2729_s24 + $0xd0] sm:$0xff] }
 0x191   : > { %1722 = vmatpush1.bf16.xpose.msra.mxu0 %v1721_v40  ;;  %v534_v40 = vld [vmem:[%s2737_s14 + $0x310] sm:$0xff] }
 0x192   : > { %1724 = vmatprep.subr.bf16.mxu0 %v1723_v42  ;;  %v662_v42 = vld [vmem:[%s2737_s14 + $0x710] sm:$0xff] }
 0x193   : > { %1850 = vmatpush1.bf16.xpose.msra.mxu1 %v1849_v41  ;;  %v538_v41 = vld [vmem:[%s2737_s14 + $0x330] sm:$0xff] }
 0x194   : > { %1852 = vmatprep.subr.bf16.mxu1 %v1851_v43  ;;  %v666_v43 = vld [vmem:[%s2737_s14 + $0x730] sm:$0xff]  ;;  %v1745_v48 = vpack.c.bf16 %v538_v41, %v534_v40 }
 0x195   : > { %v1873_v49 = vpack.c.bf16 %v666_v43, %v662_v42 }
 0x199   : > { %1726 = vmatpush1.bf16.xpose.msra.mxu0 %v1725_v52  ;;  %v542_v52 = vld [vmem:[%s2737_s14 + $0x350] sm:$0xff] }
 0x19a   : > { %1728 = vmatprep.subr.bf16.mxu0 %v1727_v54  ;;  %v670_v54 = vld [vmem:[%s2737_s14 + $0x750] sm:$0xff] }
 0x19b   : > { %1854 = vmatpush1.bf16.xpose.msra.mxu1 %v1853_v53  ;;  %v546_v53 = vld [vmem:[%s2737_s14 + $0x370] sm:$0xff] }
 0x19c   : > { %1856 = vmatprep.subr.bf16.mxu1 %v1855_v55  ;;  %v674_v55 = vld [vmem:[%s2737_s14 + $0x770] sm:$0xff]  ;;  %v1749_v60 = vpack.c.bf16 %v546_v53, %v542_v52 }
 0x19d   : > { %v1877_v61 = vpack.c.bf16 %v674_v55, %v670_v54 }
 0x1a1   : > { %1730 = vmatpush1.bf16.xpose.msra.mxu0 %v1729_v0  ;;  %v550_v0 = vld [vmem:[%s2737_s14 + $0x390] sm:$0xff] }
 0x1a2   : > { %1732 = vmatprep.subr.bf16.mxu0 %v1731_v2  ;;  %v678_v2 = vld [vmem:[%s2737_s14 + $0x790] sm:$0xff] }
 0x1a3   : > { %1858 = vmatpush1.bf16.xpose.msra.mxu1 %v1857_v1  ;;  %v554_v1 = vld [vmem:[%s2737_s14 + $0x3b0] sm:$0xff] }
 0x1a4   : > { %1860 = vmatprep.subr.bf16.mxu1 %v1859_v3  ;;  %v682_v3 = vld [vmem:[%s2737_s14 + $0x7b0] sm:$0xff]  ;;  %v1753_v8 = vpack.c.bf16 %v554_v1, %v550_v0 }
 0x1a5   : > { %v1881_v9 = vpack.c.bf16 %v682_v3, %v678_v2 }
 0x1a9   : > { %1734 = vmatpush1.bf16.xpose.msra.mxu0 %v1733_v12  ;;  %v558_v12 = vld [vmem:[%s2737_s14 + $0x3d0] sm:$0xff] }
 0x1aa   : > { %1736 = vmatprep.subr.bf16.mxu0 %v1735_v14  ;;  %v686_v14 = vld [vmem:[%s2737_s14 + $0x7d0] sm:$0xff] }
 0x1ab   : > { %1862 = vmatpush1.bf16.xpose.msra.mxu1 %v1861_v13  ;;  %v562_v13 = vld [vmem:[%s2737_s14 + $0x3f0] sm:$0xff] }
 0x1ac   : > { %1864 = vmatprep.subr.bf16.mxu1 %v1863_v15  ;;  %v690_v15 = vld [vmem:[%s2737_s14 + $0x7f0] sm:$0xff]  ;;  %v1757_v16 = vpack.c.bf16 %v562_v13, %v558_v12 }
 0x1ad   : > { %v1885_v17 = vpack.c.bf16 %v690_v15, %v686_v14 }
 0x1b1   : > { %1738 = vmatpush1.bf16.xpose.msra.mxu0 %v1737_v24  ;;  %v418_v24 = vld [vmem:[%s2729_s24 + $0x70] sm:$0xff] }
 0x1b2   : > { %1740 = vmatprep.subr.bf16.mxu0 %v1739_v26  ;;  %v422_v26 = vld [vmem:[%s2729_s24 + $0x90] sm:$0xff] }
 0x1b3   : > { %1866 = vmatpush1.bf16.xpose.msra.mxu1 %v1865_v25  ;;  %v423_v25 = vld [vmem:[%s2729_s24 + $0x98] sm:$0xff] }
 0x1b4   : > { %1868 = vmatprep.subr.bf16.mxu1 %v1867_v27  ;;  %v427_v27 = vld [vmem:[%s2729_s24 + $0xb8] sm:$0xff] }
 0x1b9   : > { %1742 = vmatpush1.bf16.xpose.msra.mxu0 %v1741_v36 }
 0x1ba   : > { %1744 = vmatprep.subr.bf16.mxu0 %v1743_v38 }
 0x1bb   : > { %1870 = vmatpush1.bf16.xpose.msra.mxu1 %v1869_v37  ;;  %v695_v37 = vld [vmem:[%s2761_s15 + $0x18] sm:$0xff] }
 0x1bc   : > { %1872 = vmatprep.subr.bf16.mxu1 %v1871_v39 }
 0x1c1   : > { %1746 = vmatpush1.bf16.xpose.msra.mxu0 %v1745_v48 }
 0x1c2   : > { %1748 = vmatprep.subr.bf16.mxu0 %v1747_v50 }
 0x1c3   : > { %1874 = vmatpush1.bf16.xpose.msra.mxu1 %v1873_v49  ;;  %v699_v49 = vld [vmem:[%s2761_s15 + $0x38] sm:$0xff] }
 0x1c4   : > { %1876 = vmatprep.subr.bf16.mxu1 %v1875_v51 }
 0x1c9   : > { %1750 = vmatpush1.bf16.xpose.msra.mxu0 %v1749_v60 }
 0x1ca   : > { %1752 = vmatprep.subr.bf16.mxu0 %v1751_v62 }
 0x1cb   : > { %1878 = vmatpush1.bf16.xpose.msra.mxu1 %v1877_v61  ;;  %v703_v61 = vld [vmem:[%s2761_s15 + $0x58] sm:$0xff] }
 0x1cc   : > { %1880 = vmatprep.subr.bf16.mxu1 %v1879_v63 }
 0x1d1   : > { %1754 = vmatpush1.bf16.xpose.msra.mxu0 %v1753_v8 }
 0x1d2   : > { %1756 = vmatprep.subr.bf16.mxu0 %v1755_v10 }
 0x1d3   : > { %1882 = vmatpush1.bf16.xpose.msra.mxu1 %v1881_v9  ;;  %v707_v9 = vld [vmem:[%s2761_s15 + $0x78] sm:$0xff] }
 0x1d4   : > { %1884 = vmatprep.subr.bf16.mxu1 %v1883_v11 }
 0x1d9   : > { %1758 = vmatpush1.bf16.xpose.msra.mxu0 %v1757_v16  ;;  %v708_v16 = vld [vmem:[%s2761_s15 + $0x80] sm:$0xff] }
 0x1db   : > { %1886 = vmatpush1.bf16.xpose.msra.mxu1 %v1885_v17 }
 0x1e0   : > { %902 = vmatmul.mubr.f32.vlgmr.msra.gmra.mrb[0].mxu0 %v406_v18 }
 0x1e1   : > { %907 = vmatprep.mubr.f32.mxu0 %v411_v19 }
 0x1e2   : > { %1128 = vmatmul.mubr.f32.vlgmr.msra.gmra.mrb[0].mxu1 %v406_v18  ;;  %v710_v18 = vld [vmem:[%s2761_s15 + $0x90] sm:$0xff] }
 0x1e3   : > { %1133 = vmatprep.mubr.f32.mxu1 %v411_v19  ;;  %v709_v19 = vld [vmem:[%s2761_s15 + $0x88] sm:$0xff] }
 0x1e4   : > { %908 = vmatmul.mubr.f32.gmra.mrb[2].mxu0 %v410_v20 }
 0x1e5   : > { %913 = vmatprep.mubr.f32.mxu0 %v415_v21 }
 0x1e6   : > { %1134 = vmatmul.mubr.f32.gmra.mrb[2].mxu1 %v410_v20 }
 0x1e7   : > { %1139 = vmatprep.mubr.f32.mxu1 %v415_v21  ;;  %v711_v21 = vld [vmem:[%s2761_s15 + $0x98] sm:$0xff] }
 0x1e8   : > { %914 = vmatmul.mubr.f32.gmra.mrb[4].mxu0 %v414_v22 }
 0x1e9   : > { %919 = vmatprep.mubr.f32.mxu0 %v419_v23 }
 0x1ea   : > { %1140 = vmatmul.mubr.f32.gmra.mrb[4].mxu1 %v414_v22 }
 0x1eb   : > { %1145 = vmatprep.mubr.f32.mxu1 %v419_v23 }
 0x1ec   : > { %920 = vmatmul.mubr.f32.gmra.mrb[6].mxu0 %v418_v24 }
 0x1ed   : > { %925 = vmatprep.mubr.f32.mxu0 %v423_v25 }
 0x1ee   : > { %1146 = vmatmul.mubr.f32.gmra.mrb[6].mxu1 %v418_v24 }
 0x1ef   : > { %1151 = vmatprep.mubr.f32.mxu1 %v423_v25 }
 0x1f0   : > { %926 = vmatmul.mubr.f32.gmra.mrb[8].mxu0 %v422_v26 }
 0x1f1   : > { %931 = vmatprep.mubr.f32.mxu0 %v427_v27 }
 0x1f2   : > { %1152 = vmatmul.mubr.f32.gmra.mrb[8].mxu1 %v422_v26 }
 0x1f3   : > { %1157 = vmatprep.mubr.f32.mxu1 %v427_v27 }
 0x1f4   : > { %932 = vmatmul.mubr.f32.gmra.mrb[10].mxu0 %v426_v28 }
 0x1f5   : > { %937 = vmatprep.mubr.f32.mxu0 %v431_v29 }
 0x1f6   : > { %1158 = vmatmul.mubr.f32.gmra.mrb[10].mxu1 %v426_v28  ;;  %v712_v28 = vld [vmem:[%s2761_s15 + $0xa0] sm:$0xff] }
 0x1f7   : > { %1163 = vmatprep.mubr.f32.mxu1 %v431_v29 }
 0x1f8   : > { %938 = vmatmul.mubr.f32.gmra.mrb[12].mxu0 %v430_v30 }
 0x1f9   : > { %943 = vmatprep.mubr.f32.mxu0 %v435_v31 }
 0x1fa   : > { %1164 = vmatmul.mubr.f32.gmra.mrb[12].mxu1 %v430_v30  ;;  %v714_v30 = vld [vmem:[%s2761_s15 + $0xb0] sm:$0xff] }
 0x1fb   : > { %1169 = vmatprep.mubr.f32.mxu1 %v435_v31  ;;  %v713_v31 = vld [vmem:[%s2761_s15 + $0xa8] sm:$0xff] }
 0x1fc   : > { %944 = vmatmul.mubr.f32.gmra.mrb[14].mxu0 %v434_v32 }
 0x1fe   : > { %1170 = vmatmul.mubr.f32.gmra.mrb[14].mxu1 %v434_v32 }
 0x2b3   : > { %v903_v36 = vpop.f32.mrb[0].mxu0 }
 0x2b4   : > { %v1176_v38 = vadd.f32 %v903_v36, %v692_v33  ;;  %v905_v40 = vpop.f32.mrb[1].mxu0  ;;  %v715_v33 = vld [vmem:[%s2761_s15 + $0xb8] sm:$0xff] }
 0x2b5   : > { %v1129_v39 = vpop.f32.mrb[0].mxu1  ;;  %v1177_v42 = vadd.f32 %v905_v40, %v693_v35  ;;  %v716_v40 = vld [vmem:[%s2761_s15 + $0xc0] sm:$0xff] }
 0x2b6   : > { %v1178_v41 = vadd.f32 %v1129_v39, %v694_v34  ;;  %v1131_v43 = vpop.f32.mrb[1].mxu1  ;;  %1208 = vst [vmem:[%s2761_s15] sm:$0xff] %v1176_v38 }
 0x2b7   : > { %v1179_v45 = vadd.f32 %v1131_v43, %v695_v37  ;;  %1209 = vst [vmem:[%s2761_s15 + $0x8] sm:$0xff] %v1177_v42  ;;  %v909_v48 = vpop.f32.mrb[2].mxu0  ;;  %v718_v42 = vld [vmem:[%s2761_s15 + $0xd0] sm:$0xff]  ;;  %v717_v43 = vld [vmem:[%s2761_s15 + $0xc8] sm:$0xff] }
 0x2b8   : > { %1210 = vst [vmem:[%s2761_s15 + $0x10] sm:$0xff] %v1178_v41  ;;  %v1180_v50 = vadd.f32 %v909_v48, %v696_v44  ;;  %v911_v52 = vpop.f32.mrb[3].mxu0 }
 0x2b9   : > { %1211 = vst [vmem:[%s2761_s15 + $0x18] sm:$0xff] %v1179_v45  ;;  %v1135_v51 = vpop.f32.mrb[2].mxu1  ;;  %v1181_v54 = vadd.f32 %v911_v52, %v697_v47  ;;  %v719_v45 = vld [vmem:[%s2761_s15 + $0xd8] sm:$0xff]  ;;  %v720_v52 = vld [vmem:[%s2761_s15 + $0xe0] sm:$0xff] }
 0x2ba   : > { %v1182_v53 = vadd.f32 %v1135_v51, %v698_v46  ;;  %v1137_v55 = vpop.f32.mrb[3].mxu1  ;;  %1212 = vst [vmem:[%s2761_s15 + $0x20] sm:$0xff] %v1180_v50 }
 0x2bb   : > { %v1183_v57 = vadd.f32 %v1137_v55, %v699_v49  ;;  %1213 = vst [vmem:[%s2761_s15 + $0x28] sm:$0xff] %v1181_v54  ;;  %v915_v60 = vpop.f32.mrb[4].mxu0  ;;  %v722_v54 = vld [vmem:[%s2761_s15 + $0xf0] sm:$0xff]  ;;  %v721_v55 = vld [vmem:[%s2761_s15 + $0xe8] sm:$0xff] }
 0x2bc   : > { %1214 = vst [vmem:[%s2761_s15 + $0x30] sm:$0xff] %v1182_v53  ;;  %v1184_v62 = vadd.f32 %v915_v60, %v700_v56  ;;  %v917_v0 = vpop.f32.mrb[5].mxu0 }
 0x2bd   : > { %1215 = vst [vmem:[%s2761_s15 + $0x38] sm:$0xff] %v1183_v57  ;;  %v1141_v63 = vpop.f32.mrb[4].mxu1  ;;  %v1185_v2 = vadd.f32 %v917_v0, %v701_v59  ;;  %v723_v57 = vld [vmem:[%s2761_s15 + $0xf8] sm:$0xff] }
 0x2be   : > { %v1186_v1 = vadd.f32 %v1141_v63, %v702_v58  ;;  %v1143_v3 = vpop.f32.mrb[5].mxu1  ;;  %1216 = vst [vmem:[%s2761_s15 + $0x40] sm:$0xff] %v1184_v62 }
 0x2bf   : > { %v1187_v5 = vadd.f32 %v1143_v3, %v703_v61  ;;  %1217 = vst [vmem:[%s2761_s15 + $0x48] sm:$0xff] %v1185_v2  ;;  %v921_v8 = vpop.f32.mrb[6].mxu0  ;;  %v1276_v3 = vld [vmem:[%s2747_s9] sm:$0xf] (!%p1620_p8) }
 0x2c0   : > { %1218 = vst [vmem:[%s2761_s15 + $0x50] sm:$0xff] %v1186_v1  ;;  %v1188_v10 = vadd.f32 %v921_v8, %v704_v4  ;;  %v923_v12 = vpop.f32.mrb[7].mxu0  ;;  %v1278_v1 = vlaneseq (!%p1620_p8)  ;;  %v1330_v4 = vld [vmem:[%s2754_s29] sm:$0xf] (!%p1620_p8) }
 0x2c1   : > { %1219 = vst [vmem:[%s2761_s15 + $0x58] sm:$0xff] %v1187_v5  ;;  %v1147_v11 = vpop.f32.mrb[6].mxu1  ;;  %v1189_v14 = vadd.f32 %v923_v12, %v705_v7  ;;  %v1244_v5 = vld [vmem:[%s2761_s15] sm:$0xff] (!%p1620_p8)  ;;  %v1245_v7 = vld [vmem:[%s2761_s15 + $0x8] sm:$0xff] (!%p1620_p8) }
 0x2c2   : > { %v1190_v13 = vadd.f32 %v1147_v11, %v706_v6  ;;  %v1149_v15 = vpop.f32.mrb[7].mxu1  ;;  %1220 = vst [vmem:[%s2761_s15 + $0x60] sm:$0xff] %v1188_v10  ;;  %v1279_v2 = vshrl.u32 (!%p1620_p8), %v1278_v1, 7  ;;  %v1246_v11 = vld [vmem:[%s2761_s15 + $0x10] sm:$0xff] (!%p1620_p8)  ;;  %v1248_v12 = vld [vmem:[%s2761_s15 + $0x20] sm:$0xff] (!%p1620_p8) }
 0x2c3   : > { %v1191_v17 = vadd.f32 %v1149_v15, %v707_v9  ;;  %1221 = vst [vmem:[%s2761_s15 + $0x68] sm:$0xff] %v1189_v14  ;;  %v927_v20 = vpop.f32.mrb[8].mxu0 }
 0x2c4   : > { %1222 = vst [vmem:[%s2761_s15 + $0x70] sm:$0xff] %v1190_v13  ;;  %v1192_v22 = vadd.f32 %v927_v20, %v708_v16  ;;  %v929_v24 = vpop.f32.mrb[9].mxu0  ;;  %v1280_v6 = vsub.s32 (!%p1620_p8), 0, %v1279_v2  ;;  %v1284_v8 = vsub.s32 (!%p1620_p8), 1, %v1279_v2  ;;  %v1288_v9 = vsub.s32 (!%p1620_p8), 2, %v1279_v2  ;;  %v1249_v13 = vld [vmem:[%s2761_s15 + $0x28] sm:$0xff] (!%p1620_p8) }
 0x2c5   : > { %1223 = vst [vmem:[%s2761_s15 + $0x78] sm:$0xff] %v1191_v17  ;;  %v1153_v23 = vpop.f32.mrb[8].mxu1  ;;  %v1193_v26 = vadd.f32 %v929_v24, %v709_v19  ;;  %v1292_v10 = vsub.s32 (!%p1620_p8), 3, %v1279_v2  ;;  %v1250_v19 = vld [vmem:[%s2761_s15 + $0x30] sm:$0xff] (!%p1620_p8)  ;;  %v1251_v20 = vld [vmem:[%s2761_s15 + $0x38] sm:$0xff] (!%p1620_p8) }
 0x2c6   : > { %v1194_v25 = vadd.f32 %v1153_v23, %v710_v18  ;;  %v1155_v27 = vpop.f32.mrb[9].mxu1  ;;  %1224 = vst [vmem:[%s2761_s15 + $0x80] sm:$0xff] %v1192_v22  ;;  %v3156_v14 = vrot.slane (!%p1620_p8), %v1276_v3, %v1280_v6  ;;  %v3158_v15 = vrot.slane (!%p1620_p8), %v1330_v4, %v1280_v6  ;;  %v3160_v16 = vrot.slane (!%p1620_p8), %v1276_v3, %v1284_v8  ;;  %v1247_v18 = vld [vmem:[%s2761_s15 + $0x18] sm:$0xff] (!%p1620_p8) }
 0x2c7   : > { %v1195_v29 = vadd.f32 %v1155_v27, %v711_v21  ;;  %1225 = vst [vmem:[%s2761_s15 + $0x88] sm:$0xff] %v1193_v26  ;;  %v933_v32 = vpop.f32.mrb[10].mxu0  ;;  %v3162_v17 = vrot.slane (!%p1620_p8), %v1330_v4, %v1284_v8  ;;  %v3167_v21 = vrot.slane (!%p1620_p8), %v1276_v3, %v1288_v9  ;;  %v3169_v22 = vrot.slane (!%p1620_p8), %v1330_v4, %v1288_v9 }
 0x2c8   : > { %1226 = vst [vmem:[%s2761_s15 + $0x90] sm:$0xff] %v1194_v25  ;;  %v1196_v34 = vadd.f32 %v933_v32, %v712_v28  ;;  %v935_v36 = vpop.f32.mrb[11].mxu0  ;;  %v3171_v23 = vrot.slane (!%p1620_p8), %v1276_v3, %v1292_v10  ;;  %v3173_v24 = vrot.slane (!%p1620_p8), %v1330_v4, %v1292_v10  ;;  %v1298_v25 = vmul.f32 (!%p1620_p8), %v3156_v14, %v1244_v5 }
 0x2c9   : > { %1227 = vst [vmem:[%s2761_s15 + $0x98] sm:$0xff] %v1195_v29  ;;  %v1159_v35 = vpop.f32.mrb[10].mxu1  ;;  %v1197_v38 = vadd.f32 %v935_v36, %v713_v31  ;;  %v1299_v26 = vmul.f32 (!%p1620_p8), %v3160_v16, %v1245_v7  ;;  %v1302_v27 = vmul.f32 (!%p1620_p8), %v3156_v14, %v1248_v12  ;;  %v1303_v28 = vmul.f32 (!%p1620_p8), %v3160_v16, %v1249_v13  ;;  %v1252_v29 = vld [vmem:[%s2761_s15 + $0x40] sm:$0xff] (!%p1620_p8)  ;;  %v1255_v36 = vld [vmem:[%s2761_s15 + $0x58] sm:$0xff] (!%p1620_p8) }
 0x2ca   : > { %v1198_v37 = vadd.f32 %v1159_v35, %v714_v30  ;;  %v1161_v39 = vpop.f32.mrb[11].mxu1  ;;  %1228 = vst [vmem:[%s2761_s15 + $0xa0] sm:$0xff] %v1196_v34  ;;  %v1253_v30 = vld [vmem:[%s2761_s15 + $0x48] sm:$0xff] (!%p1620_p8)  ;;  %v1300_v31 = vmul.f32 (!%p1620_p8), %v3167_v21, %v1246_v11  ;;  %v1301_v32 = vmul.f32 (!%p1620_p8), %v3171_v23, %v1247_v18  ;;  %v1305_v34 = vmul.f32 (!%p1620_p8), %v3171_v23, %v1251_v20  ;;  %v1254_v35 = vld [vmem:[%s2761_s15 + $0x50] sm:$0xff] (!%p1620_p8) }
 0x2cb   : > { %v1199_v41 = vadd.f32 %v1161_v39, %v715_v33  ;;  %1229 = vst [vmem:[%s2761_s15 + $0xa8] sm:$0xff] %v1197_v38  ;;  %v939_v44 = vpop.f32.mrb[12].mxu0  ;;  %v1304_v33 = vmul.f32 (!%p1620_p8), %v3167_v21, %v1250_v19  ;;  %v1352_v38 = vadd.f32 (!%p1620_p8), %v3158_v15, %v1298_v25  ;;  %v1353_v39 = vadd.f32 (!%p1620_p8), %v3162_v17, %v1299_v26 }
 0x2cc   : > { %1230 = vst [vmem:[%s2761_s15 + $0xb0] sm:$0xff] %v1198_v37  ;;  %v1200_v46 = vadd.f32 %v939_v44, %v716_v40  ;;  %v941_v48 = vpop.f32.mrb[13].mxu0  ;;  %v1256_v37 = vld [vmem:[%s2761_s15 + $0x60] sm:$0xff] (!%p1620_p8)  ;;  %v1356_v40 = vadd.f32 (!%p1620_p8), %v3158_v15, %v1302_v27  ;;  %v1259_v44 = vld [vmem:[%s2761_s15 + $0x78] sm:$0xff] (!%p1620_p8) }
 0x2cd   : > { %1231 = vst [vmem:[%s2761_s15 + $0xb8] sm:$0xff] %v1199_v41  ;;  %v1165_v47 = vpop.f32.mrb[12].mxu1  ;;  %v1201_v50 = vadd.f32 %v941_v48, %v717_v43  ;;  %v1357_v41 = vadd.f32 (!%p1620_p8), %v3162_v17, %v1303_v28  ;;  %v1258_v43 = vld [vmem:[%s2761_s15 + $0x70] sm:$0xff] (!%p1620_p8)  ;;  %v1359_v48 = vadd.f32 (!%p1620_p8), %v3173_v24, %v1305_v34  ;;  %1384 = vst [vmem:[%s2761_s15] sm:$0xff] (!%p1620_p8), %v1352_v38 }
 0x2ce   : > { %v1202_v49 = vadd.f32 %v1165_v47, %v718_v42  ;;  %v1167_v51 = vpop.f32.mrb[13].mxu1  ;;  %1232 = vst [vmem:[%s2761_s15 + $0xc0] sm:$0xff] %v1200_v46  ;;  %v1257_v42 = vld [vmem:[%s2761_s15 + $0x68] sm:$0xff] (!%p1620_p8)  ;;  %v1355_v46 = vadd.f32 (!%p1620_p8), %v3173_v24, %v1301_v32  ;;  %v1358_v47 = vadd.f32 (!%p1620_p8), %v3169_v22, %v1304_v33  ;;  %1385 = vst [vmem:[%s2761_s15 + $0x8] sm:$0xff] (!%p1620_p8), %v1353_v39 }
 0x2cf   : > { %v1203_v53 = vadd.f32 %v1167_v51, %v719_v45  ;;  %1233 = vst [vmem:[%s2761_s15 + $0xc8] sm:$0xff] %v1201_v50  ;;  %v945_v56 = vpop.f32.mrb[14].mxu0  ;;  %1243 = sbr.rel (%p1620_p8) target bundleno = 740 (0x2e4), region = 60  ;;  %v1354_v45 = vadd.f32 (!%p1620_p8), %v3169_v22, %v1300_v31  ;;  %1388 = vst [vmem:[%s2761_s15 + $0x20] sm:$0xff] (!%p1620_p8), %v1356_v40  ;;  %v1307_v50 = vmul.f32 (!%p1620_p8), %v3160_v16, %v1253_v30 }
 0x2d0   : > { %1234 = vst [vmem:[%s2761_s15 + $0xd0] sm:$0xff] %v1202_v49  ;;  %v1204_v58 = vadd.f32 %v945_v56, %v720_v52  ;;  %v947_v60 = vpop.f32.mrb[15].mxu0  ;;  %1389 = vst [vmem:[%s2761_s15 + $0x28] sm:$0xff] (!%p1620_p8), %v1357_v41  ;;  %v1306_v49 = vmul.f32 (!%p1620_p8), %v3156_v14, %v1252_v29  ;;  %v1308_v51 = vmul.f32 (!%p1620_p8), %v3167_v21, %v1254_v35 }
 0x2d1   : > { %1235 = vst [vmem:[%s2761_s15 + $0xd8] sm:$0xff] %v1203_v53  ;;  %v1171_v59 = vpop.f32.mrb[14].mxu1  ;;  %v1205_v62 = vadd.f32 %v947_v60, %v721_v55  ;;  %v1309_v52 = vmul.f32 (!%p1620_p8), %v3171_v23, %v1255_v36  ;;  %v1260_v53 = vld [vmem:[%s2761_s15 + $0x80] sm:$0xff] (!%p1620_p8)  ;;  %1386 = vst [vmem:[%s2761_s15 + $0x10] sm:$0xff] (!%p1620_p8), %v1354_v45  ;;  %v1310_v55 = vmul.f32 (!%p1620_p8), %v3156_v14, %v1256_v37  ;;  %v1263_v60 = vld [vmem:[%s2761_s15 + $0x98] sm:$0xff] (!%p1620_p8) }
 0x2d2   : > { %v1206_v61 = vadd.f32 %v1171_v59, %v722_v54  ;;  %v1173_v63 = vpop.f32.mrb[15].mxu1  ;;  %1236 = vst [vmem:[%s2761_s15 + $0xe0] sm:$0xff] %v1204_v58  ;;  %v1261_v54 = vld [vmem:[%s2761_s15 + $0x88] sm:$0xff] (!%p1620_p8)  ;;  %1387 = vst [vmem:[%s2761_s15 + $0x18] sm:$0xff] (!%p1620_p8), %v1355_v46  ;;  %v1311_v56 = vmul.f32 (!%p1620_p8), %v3160_v16, %v1257_v42  ;;  %v1313_v58 = vmul.f32 (!%p1620_p8), %v3171_v23, %v1259_v44  ;;  %v1262_v59 = vld [vmem:[%s2761_s15 + $0x90] sm:$0xff] (!%p1620_p8) }
 0x2d3   : > { %v1207_v0 = vadd.f32 %v1173_v63, %v723_v57  ;;  %1237 = vst [vmem:[%s2761_s15 + $0xe8] sm:$0xff] %v1205_v62  ;;  %1390 = vst [vmem:[%s2761_s15 + $0x30] sm:$0xff] (!%p1620_p8), %v1358_v47  ;;  %v1312_v57 = vmul.f32 (!%p1620_p8), %v3167_v21, %v1258_v43  ;;  %v1360_v62 = vadd.f32 (!%p1620_p8), %v3158_v15, %v1306_v49  ;;  %v1265_v2 = vld [vmem:[%s2761_s15 + $0xa8] sm:$0xff] (!%p1620_p8)  ;;  %v1266_v3 = vld [vmem:[%s2761_s15 + $0xb0] sm:$0xff] (!%p1620_p8) }
 0x2d4   : > { %1238 = vst [vmem:[%s2761_s15 + $0xf0] sm:$0xff] %v1206_v61  ;;  %1391 = vst [vmem:[%s2761_s15 + $0x38] sm:$0xff] (!%p1620_p8), %v1359_v48  ;;  %v1264_v61 = vld [vmem:[%s2761_s15 + $0xa0] sm:$0xff] (!%p1620_p8)  ;;  %v1361_v63 = vadd.f32 (!%p1620_p8), %v3162_v17, %v1307_v50  ;;  %v1363_v1 = vadd.f32 (!%p1620_p8), %v3173_v24, %v1309_v52  ;;  %v1267_v4 = vld [vmem:[%s2761_s15 + $0xb8] sm:$0xff] (!%p1620_p8)  ;;  %v1364_v5 = vadd.f32 (!%p1620_p8), %v3158_v15, %v1310_v55 }
 0x2d5   : > { %1239 = vst [vmem:[%s2761_s15 + $0xf8] sm:$0xff] %v1207_v0  ;;  %v1362_v0 = vadd.f32 (!%p1620_p8), %v3169_v22, %v1308_v51  ;;  %v1365_v6 = vadd.f32 (!%p1620_p8), %v3162_v17, %v1311_v56  ;;  %v1366_v7 = vadd.f32 (!%p1620_p8), %v3169_v22, %v1312_v57  ;;  %v1367_v8 = vadd.f32 (!%p1620_p8), %v3173_v24, %v1313_v58  ;;  %v1268_v13 = vld [vmem:[%s2761_s15 + $0xc0] sm:$0xff] (!%p1620_p8) }
 0x2d6   : > { %1392 = vst [vmem:[%s2761_s15 + $0x40] sm:$0xff] %v1360_v62  ;;  %1393 = vst [vmem:[%s2761_s15 + $0x48] sm:$0xff] %v1361_v63  ;;  %v1314_v9 = vmul.f32 %v3156_v14, %v1260_v53  ;;  %v1315_v10 = vmul.f32 %v3160_v16, %v1261_v54  ;;  %v1316_v11 = vmul.f32 %v3167_v21, %v1262_v59  ;;  %v1269_v18 = vld [vmem:[%s2761_s15 + $0xc8] sm:$0xff] }
 0x2d7   : > { %1394 = vst [vmem:[%s2761_s15 + $0x50] sm:$0xff] %v1362_v0  ;;  %1395 = vst [vmem:[%s2761_s15 + $0x58] sm:$0xff] %v1363_v1  ;;  %v1317_v12 = vmul.f32 %v3171_v23, %v1263_v60  ;;  %v1318_v19 = vmul.f32 %v3156_v14, %v1264_v61  ;;  %v1319_v20 = vmul.f32 %v3160_v16, %v1265_v2  ;;  %v1270_v27 = vld [vmem:[%s2761_s15 + $0xd0] sm:$0xff] }
 0x2d8   : > { %1396 = vst [vmem:[%s2761_s15 + $0x60] sm:$0xff] %v1364_v5  ;;  %1397 = vst [vmem:[%s2761_s15 + $0x68] sm:$0xff] %v1365_v6  ;;  %v1320_v25 = vmul.f32 %v3167_v21, %v1266_v3  ;;  %v1321_v26 = vmul.f32 %v3171_v23, %v1267_v4  ;;  %v1271_v28 = vld [vmem:[%s2761_s15 + $0xd8] sm:$0xff]  ;;  %v1368_v30 = vadd.f32 %v3158_v15, %v1314_v9 }
 0x2d9   : > { %1398 = vst [vmem:[%s2761_s15 + $0x70] sm:$0xff] %v1366_v7  ;;  %1399 = vst [vmem:[%s2761_s15 + $0x78] sm:$0xff] %v1367_v8  ;;  %v1272_v29 = vld [vmem:[%s2761_s15 + $0xe0] sm:$0xff]  ;;  %v1369_v31 = vadd.f32 %v3162_v17, %v1315_v10  ;;  %v1370_v32 = vadd.f32 %v3169_v22, %v1316_v11  ;;  %v1371_v33 = vadd.f32 %v3173_v24, %v1317_v12 }
 0x2da   : > { %v1273_v34 = vld [vmem:[%s2761_s15 + $0xe8] sm:$0xff]  ;;  %v1372_v37 = vadd.f32 %v3158_v15, %v1318_v19  ;;  %v1373_v38 = vadd.f32 %v3162_v17, %v1319_v20  ;;  %v1374_v39 = vadd.f32 %v3169_v22, %v1320_v25  ;;  %v1375_v40 = vadd.f32 %v3173_v24, %v1321_v26  ;;  %1400 = vst [vmem:[%s2761_s15 + $0x80] sm:$0xff] %v1368_v30 }
 0x2db   : > { %v1274_v35 = vld [vmem:[%s2761_s15 + $0xf0] sm:$0xff]  ;;  %1401 = vst [vmem:[%s2761_s15 + $0x88] sm:$0xff] %v1369_v31  ;;  %1402 = vst [vmem:[%s2761_s15 + $0x90] sm:$0xff] %v1370_v32  ;;  %v1322_v41 = vmul.f32 %v3156_v14, %v1268_v13  ;;  %v1323_v42 = vmul.f32 %v3160_v16, %v1269_v18  ;;  %v1324_v43 = vmul.f32 %v3167_v21, %v1270_v27 }
 0x2dc   : > { %v1275_v36 = vld [vmem:[%s2761_s15 + $0xf8] sm:$0xff]  ;;  %1403 = vst [vmem:[%s2761_s15 + $0x98] sm:$0xff] %v1371_v33  ;;  %v1325_v44 = vmul.f32 %v3171_v23, %v1271_v28  ;;  %1404 = vst [vmem:[%s2761_s15 + $0xa0] sm:$0xff] %v1372_v37  ;;  %v1326_v45 = vmul.f32 %v3156_v14, %v1272_v29  ;;  %v1327_v46 = vmul.f32 %v3160_v16, %v1273_v34 }
 0x2dd   : > { %1405 = vst [vmem:[%s2761_s15 + $0xa8] sm:$0xff] %v1373_v38  ;;  %1406 = vst [vmem:[%s2761_s15 + $0xb0] sm:$0xff] %v1374_v39  ;;  %v1328_v47 = vmul.f32 %v3167_v21, %v1274_v35  ;;  %v1329_v48 = vmul.f32 %v3171_v23, %v1275_v36  ;;  %v1376_v49 = vadd.f32 %v3158_v15, %v1322_v41 }
 0x2de   : > { %1407 = vst [vmem:[%s2761_s15 + $0xb8] sm:$0xff] %v1375_v40  ;;  %v1377_v50 = vadd.f32 %v3162_v17, %v1323_v42  ;;  %v1378_v51 = vadd.f32 %v3169_v22, %v1324_v43  ;;  %v1379_v52 = vadd.f32 %v3173_v24, %v1325_v44  ;;  %v1380_v14 = vadd.f32 %v3158_v15, %v1326_v45 }
 0x2df   : > { %v1381_v53 = vadd.f32 %v3162_v17, %v1327_v46  ;;  %v1382_v16 = vadd.f32 %v3169_v22, %v1328_v47  ;;  %v1383_v21 = vadd.f32 %v3173_v24, %v1329_v48  ;;  %1408 = vst [vmem:[%s2761_s15 + $0xc0] sm:$0xff] %v1376_v49 }
 0x2e0   : > { %1409 = vst [vmem:[%s2761_s15 + $0xc8] sm:$0xff] %v1377_v50  ;;  %1410 = vst [vmem:[%s2761_s15 + $0xd0] sm:$0xff] %v1378_v51 }
 0x2e1   : > { %1411 = vst [vmem:[%s2761_s15 + $0xd8] sm:$0xff] %v1379_v52  ;;  %1412 = vst [vmem:[%s2761_s15 + $0xe0] sm:$0xff] %v1380_v14 }
 0x2e2   : > { %1413 = vst [vmem:[%s2761_s15 + $0xe8] sm:$0xff] %v1381_v53  ;;  %1414 = vst [vmem:[%s2761_s15 + $0xf0] sm:$0xff] %v1382_v16 }
 0x2e3   : > { %1415 = vst [vmem:[%s2761_s15 + $0xf8] sm:$0xff] %v1383_v21 }
 0x2e4 PF: > { %s3448_s10 = sld [smem:[#allocation19_spill]]  ;;  %s1433_s7 = sshll.u32 %s2761_s15, 4  ;;  %s3302_s7 = int_to_ptr.vmem [resolvable:$true] %s1433_s7 }
 0x2e5   : > { %s3449_s24 = sld [smem:[#allocation28_spill]]  ;;  %s1417_s3 = scalar_lea.sflag [#allocation4], %s2744_s18 }
 0x2e6   : > { %s2187_s14 = scalar_lea.vmem %s3302_s7, 4096  ;;  %p3451_p3 = scmp.ne.s32.totalorder %s3434_s8, 0 }
 0x2e7   : > { %p2188_p2 = scmp.ne.s32.totalorder %s3302_s7, %s2187_s14  ;;  %s2355_s5 = smov [#allocation10]  }
 0x2e8   : > { %s2191_s9 = sshll.u32 %s2355_s5, 4  ;;  %s2192_s9 = int_to_ptr.vmem [resolvable:$false] %s2191_s9 }
 0x2e9   : > { %p2189_p1 = pnand %p2188_p2, %p3451_p3  ;;  %s2193_s6 = scalar_lea.vmem %s2192_s9, 8192 }
 0x2ea   : > { %s1630_s23 = sshll.u32 %s3448_s10, 9  ;;  %p2194_p5 = scmp.lt.s32.totalorder %s3302_s7, %s2192_s9 }
 0x2eb   : > { %s3450_s1 = smov %s3449_s24  ;;  %s3299_s11 = scalar_lea.hbm %s3449_s24, %s1630_s23 }
 0x2ec   : > { %p2190_p12 = pneg %p2189_p1  ;;  %p2195_p13 = scmp.lt.s32.totalorder %s2193_s6, %s2187_s14 }
 0x2ee   : > { %p2196_p7 = por %p2195_p13, %p2194_p5 }
 0x2f0   : > { %p2197_p10 = pnand %p2196_p7, %p2190_p12 }
 0x2f2   : > { %2200 = shalt.err (!%p2197_p10)
}
 0x2f3   : > { %s2201_s29 = scalar_lea.hbm %s3299_s11, 4096  ;;  %s2205_s26 = scalar_lea.hbm %s3450_s1, 8192 }
 0x2f4   : > { %p2202_p11 = scmp.ne.s32.totalorder %s3299_s11, %s2201_s29  ;;  %p2206_p0 = scmp.lt.u32.totalorder %s3299_s11, %s3450_s1 }
 0x2f5   : > { %p2207_p6 = scmp.lt.u32.totalorder %s2205_s26, %s2201_s29  ;;  %p2209_p2 = scmp.lt.u32.totalorder %s2201_s29, %s3299_s11 }
 0x2f6   : > { %p2203_p9 = pnand %p2202_p11, %p3451_p3 }
 0x2f7   : > { %p2208_p8 = por %p2207_p6, %p2206_p0 }
 0x2f8   : > { %p2204_p4 = pneg %p2203_p9 }
 0x2f9   : > { %p2210_p1 = por %p2209_p2, %p2208_p8 }
 0x2fb   : > { %p2211_p12 = pnand %p2210_p1, %p2204_p4 }
 0x2fd   : > { %2214 = shalt.err (!%p2211_p12)
}
 0x2fe   : > { %s2356_s23 = smov 512   ;;  %s2357_s0 = smov 1024  }
 0x2ff   : > { %s2358_s4 = smov 32  }
 0x300   : > { %1927 = dma.vmem_to_hbm [thread:$0]  (%p3451_p3), %s3302_s7, 4096, %s3299_s11, %s1417_s3, %s2356_s23, %s2357_s0, %s2358_s4  }
 0x301 PF: > { %s3452_s24 = sld [smem:[#allocation16_spill]]  ;;  %p1947_p5 = scmp.ge.s32.totalorder %s2345_s28, 2 }
 0x302   : > { %p3453_p13 = scmp.ne.s32.totalorder %s3435_s13, 0 }
 0x304   : > { %p1943_p7 = pnand %p1947_p5, %p3453_p13 }
 0x307   : > { %s1448_s14 = sand.u32 1, %s3452_s24  }
 0x308   : > { %s1449_s5 = scalar_lea.sflag [#allocation4], %s1448_s14 }
 0x309   : > { %2288 = dma.done.wait (!%p1943_p7), %s1449_s5, 4096  }
 0x30a   : > { %2290 = vsyncadd (!%p1943_p7), %s1449_s5, 4294963200  ;;  %s26_s28 = sadd.s32 1, %s2345_s28   ;;  %s3455_s8 = sld [smem:[#allocation17_spill]] }
 0x30b   : > { %p3333_p10 = scmp.ge.s32.totalorder %s26_s28, 6   ;;  %s3456_s23 = sld [smem:[#allocation23_spill]] }
 0x30c   : > { %s3457_s24 = sld [smem:[#allocation20_spill]]  ;;  %s3458_s26 = sld [smem:[#allocation21_spill]] }
 0x30d   : > { %s3459_s13 = sld [smem:[#allocation22_spill]]  ;;  %s3460_s15 = smov %s2297_s16 }
 0x30e   : > { %s3461_s16 = smov %s2301_s17  ;;  %s3462_s17 = smov %s2630_s2 }
 0x30f   : > { %s3463_s18 = smov %s2309_s19  ;;  %s3464_s19 = smov %s2313_s20 }
 0x310   : > { %s3465_s20 = smov %s2488_s12  ;;  %s3466_s21 = smov %s2321_s22 }
 0x311   : > { %s3467_s22 = smov %s3455_s8  ;;  %s3468_s25 = smov %s2341_s27 }
 0x312   :  { %25 = sbr.rel (!%p3333_p10) target bundleno = 20 (0x14), region = 126 }
 0x313   : > { %s3469_s27 = smov %s3459_s13 }
 0x319   :  { %1454 = vsyncpa [#allocation3], 1 }
 0x31a   :  { %1456 = vsyncpa [#allocation3 + $0x1], 1 }
 0x31b   :  { %1457 = vsyncpa [#allocation6], 1 }
 0x31c   :  { %1459 = vsyncpa [#allocation6 + $0x1], 1 }
 0x31d   :  { %1460 = vsyncpa [#allocation9], 1 }
 0x31e   :  { %1462 = vsyncpa [#allocation9 + $0x1], 1 }
 0x31f   :  { %1463 = vsyncpa [#allocation4], 1 }
 0x320   :  { %1465 = vsyncpa [#allocation4 + $0x1], 1 }

</bundles_post_ra>
